<compile_context>
chip_gen: v5e
topology: v5e:2x2
jax: 0.10.0
libtpu: 0.0.40
codegen_flags: <defaults>
</compile_context>

<pallas_src>
import math

import jax
import jax.numpy as jnp
from jax import lax
from jax.experimental import pallas as pl
from jax.experimental.pallas import tpu as pltpu

KDW = 3          # DWConv kernel size
PDW = 1          # DWConv padding (halo = 1 row/col each side)


def _gelu_exact(x):
    # nn.GELU() default (erf-based)
    return 0.5 * x * (1.0 + lax.erf(x * (1.0 / math.sqrt(2.0))))


def mlp_kernel(x_ref, w1_ref, b1_ref, wdw_ref, bdw_ref, w2_ref, b2_ref,
               o_ref, hbuf):
    H, W, Cin = x_ref.shape          # full image of this batch element (resident)
    TH, _, Cout = o_ref.shape        # row tile of the output
    Chid = hbuf.shape[-1]

    bi = pl.program_id(1)
    row0 = bi * TH                   # first output row of this block

    # ---- gather TH + 2 input rows (1-row halo each side, clamped at edges) ----
    x_mid = x_ref[pl.ds(pl.multiple_of(row0, TH), TH)]           # (TH, W, Cin)
    x_top = x_ref[pl.ds(jnp.maximum(row0 - 1, 0), 1)]            # (1, W, Cin)
    x_bot = x_ref[pl.ds(jnp.minimum(row0 + TH, H - 1), 1)]       # (1, W, Cin)
    xwin = jnp.concatenate([x_top, x_mid, x_bot], axis=0)        # (TH+2, W, Cin)

    # ---- fc1: 1x1 conv == per-pixel matmul over channels (MXU), halo included ----
    h = jnp.dot(xwin.reshape((TH + 2) * W, Cin), w1_ref[...],
                preferred_element_type=jnp.float32) + b1_ref[...]
    h = h.reshape(TH + 2, W, Chid)

    # zero-mask halo rows that lie outside the image (conv zero padding is on
    # fc1's *output*, so out-of-image rows must be exactly zero, not fc1(0)=bias)
    ridx = lax.broadcasted_iota(jnp.int32, (TH + 2, 1, 1), 0) + (row0 - 1)
    h = jnp.where((ridx >= 0) & (ridx <= H - 1), h, 0.0)

    # ---- stage into padded scratch; zero only the two 1-wide column borders ----
    hbuf[:, 1:1 + W, :] = h
    zcol = jnp.zeros((TH + 2, 1, Chid), jnp.float32)
    hbuf[:, 0:1, :] = zcol
    hbuf[:, W + 1:W + 2, :] = zcol

    # ---- depthwise 3x3 (padding 1): shifted windows read directly from the ref;
    #      accumulator initialized with tap 0 and the bias folded in ----
    acc = (hbuf[0:TH, 0:W, :] * wdw_ref[0:1, :].reshape(1, 1, Chid)
           + bdw_ref[...].reshape(1, 1, Chid))
    for k in range(1, KDW * KDW):
        dy, dx = divmod(k, KDW)
        acc = acc + hbuf[dy:dy + TH, dx:dx + W, :] * wdw_ref[k:k + 1, :].reshape(1, 1, Chid)

    # ---- GELU (exact erf, matches nn.GELU default); dropout(p=0) is identity ----
    g = _gelu_exact(acc)

    # ---- fc2: 1x1 conv (MXU) ----
    y = jnp.dot(g.reshape(TH * W, Chid), w2_ref[...],
                preferred_element_type=jnp.float32) + b2_ref[...]
    o_ref[...] = y.reshape(TH, W, Cout)


def _pick_row_tile(H):
    for th in (32, 16, 8):
        if H % th == 0 and H // th >= 2:
            return th
    return H


def mlp_nhwc(x_nhwc, params):
    N, H, W, Cin = x_nhwc.shape
    Chid = params["w1"].shape[1]
    Cout = params["w2"].shape[1]
    TH = _pick_row_tile(H)
    nH = H // TH

    def const_spec(shape):
        return pl.BlockSpec(shape, lambda n, bi: (0,) * len(shape))

    in_specs = [
        # full image per batch element; index constant across bi -> fetched once
        pl.BlockSpec((None, H, W, Cin), lambda n, bi: (n, 0, 0, 0)),
        const_spec((Cin, Chid)), const_spec((1, Chid)),     # fc1
        const_spec((KDW * KDW, Chid)), const_spec((1, Chid)),  # dwconv (depthwise)
        const_spec((Chid, Cout)), const_spec((1, Cout)),    # fc2
    ]
    out_spec = pl.BlockSpec((None, TH, W, Cout), lambda n, bi: (n, bi, 0, 0))

    return pl.pallas_call(
        mlp_kernel,
        out_shape=jax.ShapeDtypeStruct((N, H, W, Cout), jnp.float32),
        grid_spec=pltpu.PrefetchScalarGridSpec(
            num_scalar_prefetch=0,
            grid=(N, nH),
            in_specs=in_specs,
            out_specs=out_spec,
            scratch_shapes=[
                pltpu.VMEM((TH + 2 * PDW, W + 2 * PDW, Chid), jnp.float32),
            ]),
        compiler_params=pltpu.CompilerParams(
            dimension_semantics=("parallel", "arbitrary"),
            vmem_limit_bytes=48 * 1024 * 1024),
    )(x_nhwc,
      params["w1"], params["b1"],
      params["wdw"], params["bdw"],
      params["w2"], params["b2"])


def mlp_forward(x_nchw, params):
    # NCHW -> NHWC, run kernel, back to NCHW
    x_nhwc = jnp.transpose(x_nchw, (0, 2, 3, 1))
    y_nhwc = mlp_nhwc(x_nhwc, params)
    return jnp.transpose(y_nhwc, (0, 3, 1, 2))


# ---------------- parameter construction (deterministic, synthetic) ----------------
def make_params(key, Cin, Chid, Cout):
    ks = jax.random.split(key, 6)
    pt = {
        "fc1_w": 0.2 * jax.random.normal(ks[0], (Chid, Cin, 1, 1), jnp.float32),
        "fc1_b": 0.1 * jax.random.normal(ks[1], (Chid,), jnp.float32),
        "dw_w": 0.2 * jax.random.normal(ks[2], (Chid, 1, KDW, KDW), jnp.float32),
        "dw_b": 0.1 * jax.random.normal(ks[3], (Chid,), jnp.float32),
        "fc2_w": 0.2 * jax.random.normal(ks[4], (Cout, Chid, 1, 1), jnp.float32),
        "fc2_b": 0.1 * jax.random.normal(ks[5], (Cout,), jnp.float32),
    }
    # repack into kernel-friendly layouts
    kp = {
        "w1": pt["fc1_w"][:, :, 0, 0].T,                                      # (Cin, Chid)
        "b1": pt["fc1_b"].reshape(1, Chid),
        "wdw": jnp.transpose(pt["dw_w"][:, 0], (1, 2, 0)).reshape(KDW * KDW, Chid),
        "bdw": pt["dw_b"].reshape(1, Chid),
        "w2": pt["fc2_w"][:, :, 0, 0].T,                                      # (Chid, Cout)
        "b2": pt["fc2_b"].reshape(1, Cout),
    }
    return pt, kp


# ---------------- pure-JAX reference (NCHW, mirrors the PyTorch module) ----------------
def ref_forward(x, pt):
    dn = ("NCHW", "OIHW", "NCHW")

    def conv1x1(h, w, b):
        y = lax.conv_general_dilated(h, w, (1, 1), "VALID", dimension_numbers=dn)
        return y + b[None, :, None, None]

    def dwconv3x3(h, w, b):
        y = lax.conv_general_dilated(h, w, (1, 1), ((PDW, PDW), (PDW, PDW)),
                                     dimension_numbers=dn,
                                     feature_group_count=h.shape[1])
        return y + b[None, :, None, None]

    h = conv1x1(x, pt["fc1_w"], pt["fc1_b"])      # fc1
    h = dwconv3x3(h, pt["dw_w"], pt["dw_b"])      # DWConv
    h = _gelu_exact(h)                            # act
    h = conv1x1(h, pt["fc2_w"], pt["fc2_b"])      # fc2   (dropout p=0 -> identity)
    return h


if __name__ == "__main__":
    # TODO(synk): nn.Dropout has p=0.0 by default -> identity; stochastic dropout not implemented.
    N, Cin, H, W = 2, 4, 16, 16
    Chid, Cout = 32, 4                            # hidden_features=32, out_features=in_features
    key = jax.random.PRNGKey(0)
    kx, kp_key = jax.random.split(key)
    x = jax.random.normal(kx, (N, Cin, H, W), jnp.float32)   # NCHW, PyTorch convention

    pt_params, kernel_params = make_params(kp_key, Cin, Chid, Cout)

    y = mlp_forward(x, kernel_params)
    y = jax.block_until_ready(y)

    y_ref = jax.block_until_ready(ref_forward(x, pt_params))
    assert y.shape == (N, Cout, H, W)
    assert jnp.allclose(y, y_ref, rtol=1e-4, atol=1e-4), (
        f"max abs err = {jnp.max(jnp.abs(y - y_ref))}")

    print("KERNEL_OK")
</pallas_src>

<mosaic_0001>
module attributes {stable_mosaic.version = 11 : i64} {
  func.func @mlp_kernel(%arg0: i32, %arg1: i32, %arg2: memref<1x16x16x4xf32, #tpu.memory_space<vmem>>, %arg3: memref<4x32xf32, #tpu.memory_space<vmem>>, %arg4: memref<1x32xf32, #tpu.memory_space<vmem>>, %arg5: memref<9x32xf32, #tpu.memory_space<vmem>>, %arg6: memref<1x32xf32, #tpu.memory_space<vmem>>, %arg7: memref<32x4xf32, #tpu.memory_space<vmem>>, %arg8: memref<1x4xf32, #tpu.memory_space<vmem>>, %arg9: memref<1x8x16x4xf32, #tpu.memory_space<vmem>>, %arg10: memref<10x18x32xf32, #tpu.memory_space<vmem>>) attributes {dimension_semantics = [#tpu.dimension_semantics<parallel>, #tpu.dimension_semantics<arbitrary>], iteration_bounds = array<i64: 2, 2>, scalar_prefetch = 0 : i64, scratch_operands = 1 : i64, tpu.core_type = #tpu.core_type<tc>, window_params = [{transform_indices = @transform_0, window_bounds = array<i64: 1, 16, 16, 4>}, {pipeline_mode = #tpu.pipeline_mode<synchronous>, transform_indices = @transform_1, window_bounds = array<i64: 4, 32>}, {pipeline_mode = #tpu.pipeline_mode<synchronous>, transform_indices = @transform_2, window_bounds = array<i64: 1, 32>}, {pipeline_mode = #tpu.pipeline_mode<synchronous>, transform_indices = @transform_3, window_bounds = array<i64: 9, 32>}, {pipeline_mode = #tpu.pipeline_mode<synchronous>, transform_indices = @transform_4, window_bounds = array<i64: 1, 32>}, {pipeline_mode = #tpu.pipeline_mode<synchronous>, transform_indices = @transform_5, window_bounds = array<i64: 32, 4>}, {pipeline_mode = #tpu.pipeline_mode<synchronous>, transform_indices = @transform_6, window_bounds = array<i64: 1, 4>}, {transform_indices = @transform_7, window_bounds = array<i64: 1, 8, 16, 4>}]} {
    %c8_i32 = arith.constant 8 : i32
    %0 = arith.muli %arg1, %c8_i32 : i32
    %1 = tpu.assume_multiple %0, 8 : i32
    %c0 = arith.constant 0 : index
    %2 = arith.index_cast %1 : i32 to index
    %c0_0 = arith.constant 0 : index
    %c0_1 = arith.constant 0 : index
    %3 = vector.load %arg2[%c0, %2, %c0_0, %c0_1] : memref<1x16x16x4xf32, #tpu.memory_space<vmem>>, vector<1x8x16x4xf32>
    %4 = vector.shape_cast %3 : vector<1x8x16x4xf32> to vector<8x16x4xf32>
    %c1_i32 = arith.constant 1 : i32
    %5 = arith.subi %0, %c1_i32 : i32
    %c0_i32 = arith.constant 0 : i32
    %6 = arith.maxsi %5, %c0_i32 : i32
    %c0_2 = arith.constant 0 : index
    %7 = arith.index_cast %6 : i32 to index
    %c0_3 = arith.constant 0 : index
    %c0_4 = arith.constant 0 : index
    %8 = vector.load %arg2[%c0_2, %7, %c0_3, %c0_4] : memref<1x16x16x4xf32, #tpu.memory_space<vmem>>, vector<1x1x16x4xf32>
    %9 = vector.shape_cast %8 : vector<1x1x16x4xf32> to vector<1x16x4xf32>
    %c8_i32_5 = arith.constant 8 : i32
    %10 = arith.addi %0, %c8_i32_5 : i32
    %c15_i32 = arith.constant 15 : i32
    %11 = arith.minsi %10, %c15_i32 : i32
    %c0_6 = arith.constant 0 : index
    %12 = arith.index_cast %11 : i32 to index
    %c0_7 = arith.constant 0 : index
    %c0_8 = arith.constant 0 : index
    %13 = vector.load %arg2[%c0_6, %12, %c0_7, %c0_8] : memref<1x16x16x4xf32, #tpu.memory_space<vmem>>, vector<1x1x16x4xf32>
    %14 = vector.shape_cast %13 : vector<1x1x16x4xf32> to vector<1x16x4xf32>
    %15 = tpu.concatenate %9, %4, %14 in 0 : vector<1x16x4xf32>, vector<8x16x4xf32>, vector<1x16x4xf32> -> vector<10x16x4xf32>
    %16 = vector.shape_cast %15 : vector<10x16x4xf32> to vector<160x4xf32>
    %c0_9 = arith.constant 0 : index
    %c0_10 = arith.constant 0 : index
    %17 = vector.load %arg3[%c0_9, %c0_10] : memref<4x32xf32, #tpu.memory_space<vmem>>, vector<4x32xf32>
    %cst = arith.constant dense<0.000000e+00> : vector<160x32xf32>
    %18 = tpu.matmul %16, %17, %cst {dimension_numbers = #tpu.dot_dimension_numbers<[1], [0], [0], [1], [0, 0, 1, 1], [], []>} : vector<160x4xf32>, vector<4x32xf32>, vector<160x32xf32> -> vector<160x32xf32>
    %c0_11 = arith.constant 0 : index
    %c0_12 = arith.constant 0 : index
    %19 = vector.load %arg4[%c0_11, %c0_12] : memref<1x32xf32, #tpu.memory_space<vmem>>, vector<1x32xf32>
    %20 = vector.broadcast %19 : vector<1x32xf32> to vector<160x32xf32>
    %21 = arith.addf %18, %20 : vector<160x32xf32>
    %22 = vector.shape_cast %21 : vector<160x32xf32> to vector<10x16x32xf32>
    %23 = tpu.iota {dimensions = array<i32: 0>} : vector<10x1x1xi32>
    %c1_i32_13 = arith.constant 1 : i32
    %24 = arith.subi %0, %c1_i32_13 : i32
    %25 = vector.broadcast %24 : i32 to vector<10x1x1xi32>
    %26 = arith.addi %23, %25 : vector<10x1x1xi32>
    %c0_i32_14 = arith.constant 0 : i32
    %27 = vector.broadcast %c0_i32_14 : i32 to vector<10x1x1xi32>
    %28 = arith.cmpi sge, %26, %27 : vector<10x1x1xi32>
    %c15_i32_15 = arith.constant 15 : i32
    %29 = vector.broadcast %c15_i32_15 : i32 to vector<10x1x1xi32>
    %30 = arith.cmpi sle, %26, %29 : vector<10x1x1xi32>
    %31 = arith.andi %28, %30 : vector<10x1x1xi1>
    %cst_16 = arith.constant 0.000000e+00 : f32
    %32 = vector.shape_cast %31 : vector<10x1x1xi1> to vector<10x1x1xi1>
    %33 = vector.broadcast %32 : vector<10x1x1xi1> to vector<10x16x32xi1>
    %34 = vector.broadcast %cst_16 : f32 to vector<10x16x32xf32>
    %35 = arith.select %33, %22, %34 : vector<10x16x32xi1>, vector<10x16x32xf32>
    %c0_17 = arith.constant 0 : index
    %c1 = arith.constant 1 : index
    %c0_18 = arith.constant 0 : index
    %36 = vector.load %arg10[%c0_17, %c1, %c0_18] : memref<10x18x32xf32, #tpu.memory_space<vmem>>, vector<10x16x32xf32>
    tpu.vector_store %arg10[%c0_17, %c1, %c0_18], %35 {strides = array<i32>} : memref<10x18x32xf32, #tpu.memory_space<vmem>>, vector<10x16x32xf32>,
    %cst_19 = arith.constant 0.000000e+00 : f32
    %37 = vector.broadcast %cst_19 : f32 to vector<10x1x32xf32>
    %c0_20 = arith.constant 0 : index
    %c0_21 = arith.constant 0 : index
    %c0_22 = arith.constant 0 : index
    %38 = vector.load %arg10[%c0_20, %c0_21, %c0_22] : memref<10x18x32xf32, #tpu.memory_space<vmem>>, vector<10x1x32xf32>
    tpu.vector_store %arg10[%c0_20, %c0_21, %c0_22], %37 {strides = array<i32>} : memref<10x18x32xf32, #tpu.memory_space<vmem>>, vector<10x1x32xf32>,
    %c0_23 = arith.constant 0 : index
    %c17 = arith.constant 17 : index
    %c0_24 = arith.constant 0 : index
    %39 = vector.load %arg10[%c0_23, %c17, %c0_24] : memref<10x18x32xf32, #tpu.memory_space<vmem>>, vector<10x1x32xf32>
    tpu.vector_store %arg10[%c0_23, %c17, %c0_24], %37 {strides = array<i32>} : memref<10x18x32xf32, #tpu.memory_space<vmem>>, vector<10x1x32xf32>,
    %c0_25 = arith.constant 0 : index
    %c0_26 = arith.constant 0 : index
    %c0_27 = arith.constant 0 : index
    %40 = vector.load %arg10[%c0_25, %c0_26, %c0_27] : memref<10x18x32xf32, #tpu.memory_space<vmem>>, vector<8x16x32xf32>
    %c0_28 = arith.constant 0 : index
    %c0_29 = arith.constant 0 : index
    %41 = vector.load %arg5[%c0_28, %c0_29] : memref<9x32xf32, #tpu.memory_space<vmem>>, vector<1x32xf32>
    %42 = vector.shape_cast %41 : vector<1x32xf32> to vector<1x1x32xf32>
    %43 = vector.broadcast %42 : vector<1x1x32xf32> to vector<8x16x32xf32>
    %44 = arith.mulf %40, %43 : vector<8x16x32xf32>
    %c0_30 = arith.constant 0 : index
    %c0_31 = arith.constant 0 : index
    %45 = vector.load %arg6[%c0_30, %c0_31] : memref<1x32xf32, #tpu.memory_space<vmem>>, vector<1x32xf32>
    %46 = vector.shape_cast %45 : vector<1x32xf32> to vector<1x1x32xf32>
    %47 = vector.broadcast %46 : vector<1x1x32xf32> to vector<8x16x32xf32>
    %48 = arith.addf %44, %47 : vector<8x16x32xf32>
    %c0_32 = arith.constant 0 : index
    %c1_33 = arith.constant 1 : index
    %c0_34 = arith.constant 0 : index
    %49 = vector.load %arg10[%c0_32, %c1_33, %c0_34] : memref<10x18x32xf32, #tpu.memory_space<vmem>>, vector<8x16x32xf32>
    %c1_35 = arith.constant 1 : index
    %c0_36 = arith.constant 0 : index
    %50 = vector.load %arg5[%c1_35, %c0_36] : memref<9x32xf32, #tpu.memory_space<vmem>>, vector<1x32xf32>
    %51 = vector.shape_cast %50 : vector<1x32xf32> to vector<1x1x32xf32>
    %52 = vector.broadcast %51 : vector<1x1x32xf32> to vector<8x16x32xf32>
    %53 = arith.mulf %49, %52 : vector<8x16x32xf32>
    %54 = arith.addf %48, %53 : vector<8x16x32xf32>
    %c0_37 = arith.constant 0 : index
    %c2 = arith.constant 2 : index
    %c0_38 = arith.constant 0 : index
    %55 = vector.load %arg10[%c0_37, %c2, %c0_38] : memref<10x18x32xf32, #tpu.memory_space<vmem>>, vector<8x16x32xf32>
    %c2_39 = arith.constant 2 : index
    %c0_40 = arith.constant 0 : index
    %56 = vector.load %arg5[%c2_39, %c0_40] : memref<9x32xf32, #tpu.memory_space<vmem>>, vector<1x32xf32>
    %57 = vector.shape_cast %56 : vector<1x32xf32> to vector<1x1x32xf32>
    %58 = vector.broadcast %57 : vector<1x1x32xf32> to vector<8x16x32xf32>
    %59 = arith.mulf %55, %58 : vector<8x16x32xf32>
    %60 = arith.addf %54, %59 : vector<8x16x32xf32>
    %c1_41 = arith.constant 1 : index
    %c0_42 = arith.constant 0 : index
    %c0_43 = arith.constant 0 : index
    %61 = vector.load %arg10[%c1_41, %c0_42, %c0_43] : memref<10x18x32xf32, #tpu.memory_space<vmem>>, vector<8x16x32xf32>
    %c3 = arith.constant 3 : index
    %c0_44 = arith.constant 0 : index
    %62 = vector.load %arg5[%c3, %c0_44] : memref<9x32xf32, #tpu.memory_space<vmem>>, vector<1x32xf32>
    %63 = vector.shape_cast %62 : vector<1x32xf32> to vector<1x1x32xf32>
    %64 = vector.broadcast %63 : vector<1x1x32xf32> to vector<8x16x32xf32>
    %65 = arith.mulf %61, %64 : vector<8x16x32xf32>
    %66 = arith.addf %60, %65 : vector<8x16x32xf32>
    %c1_45 = arith.constant 1 : index
    %c1_46 = arith.constant 1 : index
    %c0_47 = arith.constant 0 : index
    %67 = vector.load %arg10[%c1_45, %c1_46, %c0_47] : memref<10x18x32xf32, #tpu.memory_space<vmem>>, vector<8x16x32xf32>
    %c4 = arith.constant 4 : index
    %c0_48 = arith.constant 0 : index
    %68 = vector.load %arg5[%c4, %c0_48] : memref<9x32xf32, #tpu.memory_space<vmem>>, vector<1x32xf32>
    %69 = vector.shape_cast %68 : vector<1x32xf32> to vector<1x1x32xf32>
    %70 = vector.broadcast %69 : vector<1x1x32xf32> to vector<8x16x32xf32>
    %71 = arith.mulf %67, %70 : vector<8x16x32xf32>
    %72 = arith.addf %66, %71 : vector<8x16x32xf32>
    %c1_49 = arith.constant 1 : index
    %c2_50 = arith.constant 2 : index
    %c0_51 = arith.constant 0 : index
    %73 = vector.load %arg10[%c1_49, %c2_50, %c0_51] : memref<10x18x32xf32, #tpu.memory_space<vmem>>, vector<8x16x32xf32>
    %c5 = arith.constant 5 : index
    %c0_52 = arith.constant 0 : index
    %74 = vector.load %arg5[%c5, %c0_52] : memref<9x32xf32, #tpu.memory_space<vmem>>, vector<1x32xf32>
    %75 = vector.shape_cast %74 : vector<1x32xf32> to vector<1x1x32xf32>
    %76 = vector.broadcast %75 : vector<1x1x32xf32> to vector<8x16x32xf32>
    %77 = arith.mulf %73, %76 : vector<8x16x32xf32>
    %78 = arith.addf %72, %77 : vector<8x16x32xf32>
    %c2_53 = arith.constant 2 : index
    %c0_54 = arith.constant 0 : index
    %c0_55 = arith.constant 0 : index
    %79 = vector.load %arg10[%c2_53, %c0_54, %c0_55] : memref<10x18x32xf32, #tpu.memory_space<vmem>>, vector<8x16x32xf32>
    %c6 = arith.constant 6 : index
    %c0_56 = arith.constant 0 : index
    %80 = vector.load %arg5[%c6, %c0_56] : memref<9x32xf32, #tpu.memory_space<vmem>>, vector<1x32xf32>
    %81 = vector.shape_cast %80 : vector<1x32xf32> to vector<1x1x32xf32>
    %82 = vector.broadcast %81 : vector<1x1x32xf32> to vector<8x16x32xf32>
    %83 = arith.mulf %79, %82 : vector<8x16x32xf32>
    %84 = arith.addf %78, %83 : vector<8x16x32xf32>
    %c2_57 = arith.constant 2 : index
    %c1_58 = arith.constant 1 : index
    %c0_59 = arith.constant 0 : index
    %85 = vector.load %arg10[%c2_57, %c1_58, %c0_59] : memref<10x18x32xf32, #tpu.memory_space<vmem>>, vector<8x16x32xf32>
    %c7 = arith.constant 7 : index
    %c0_60 = arith.constant 0 : index
    %86 = vector.load %arg5[%c7, %c0_60] : memref<9x32xf32, #tpu.memory_space<vmem>>, vector<1x32xf32>
    %87 = vector.shape_cast %86 : vector<1x32xf32> to vector<1x1x32xf32>
    %88 = vector.broadcast %87 : vector<1x1x32xf32> to vector<8x16x32xf32>
    %89 = arith.mulf %85, %88 : vector<8x16x32xf32>
    %90 = arith.addf %84, %89 : vector<8x16x32xf32>
    %c2_61 = arith.constant 2 : index
    %c2_62 = arith.constant 2 : index
    %c0_63 = arith.constant 0 : index
    %91 = vector.load %arg10[%c2_61, %c2_62, %c0_63] : memref<10x18x32xf32, #tpu.memory_space<vmem>>, vector<8x16x32xf32>
    %c8 = arith.constant 8 : index
    %c0_64 = arith.constant 0 : index
    %92 = vector.load %arg5[%c8, %c0_64] : memref<9x32xf32, #tpu.memory_space<vmem>>, vector<1x32xf32>
    %93 = vector.shape_cast %92 : vector<1x32xf32> to vector<1x1x32xf32>
    %94 = vector.broadcast %93 : vector<1x1x32xf32> to vector<8x16x32xf32>
    %95 = arith.mulf %91, %94 : vector<8x16x32xf32>
    %96 = arith.addf %90, %95 : vector<8x16x32xf32>
    %cst_65 = arith.constant 5.000000e-01 : f32
    %97 = vector.broadcast %cst_65 : f32 to vector<8x16x32xf32>
    %98 = arith.mulf %97, %96 : vector<8x16x32xf32>
    %cst_66 = arith.constant 0.707106769 : f32
    %99 = vector.broadcast %cst_66 : f32 to vector<8x16x32xf32>
    %100 = arith.mulf %96, %99 : vector<8x16x32xf32>
    %101 = math.erf %100 : vector<8x16x32xf32>
    %cst_67 = arith.constant 1.000000e+00 : f32
    %102 = vector.broadcast %cst_67 : f32 to vector<8x16x32xf32>
    %103 = arith.addf %102, %101 : vector<8x16x32xf32>
    %104 = arith.mulf %98, %103 : vector<8x16x32xf32>
    %105 = vector.shape_cast %104 : vector<8x16x32xf32> to vector<128x32xf32>
    %c0_68 = arith.constant 0 : index
    %c0_69 = arith.constant 0 : index
    %106 = vector.load %arg7[%c0_68, %c0_69] : memref<32x4xf32, #tpu.memory_space<vmem>>, vector<32x4xf32>
    %cst_70 = arith.constant dense<0.000000e+00> : vector<128x4xf32>
    %107 = tpu.matmul %105, %106, %cst_70 {dimension_numbers = #tpu.dot_dimension_numbers<[1], [0], [0], [1], [0, 0, 1, 1], [], []>} : vector<128x32xf32>, vector<32x4xf32>, vector<128x4xf32> -> vector<128x4xf32>
    %c0_71 = arith.constant 0 : index
    %c0_72 = arith.constant 0 : index
    %108 = vector.load %arg8[%c0_71, %c0_72] : memref<1x4xf32, #tpu.memory_space<vmem>>, vector<1x4xf32>
    %109 = vector.broadcast %108 : vector<1x4xf32> to vector<128x4xf32>
    %110 = arith.addf %107, %109 : vector<128x4xf32>
    %111 = vector.shape_cast %110 : vector<128x4xf32> to vector<8x16x4xf32>
    %c0_73 = arith.constant 0 : index
    %c0_74 = arith.constant 0 : index
    %c0_75 = arith.constant 0 : index
    %c0_76 = arith.constant 0 : index
    %112 = vector.load %arg9[%c0_73, %c0_74, %c0_75, %c0_76] : memref<1x8x16x4xf32, #tpu.memory_space<vmem>>, vector<1x8x16x4xf32>
    %113 = vector.shape_cast %112 : vector<1x8x16x4xf32> to vector<8x16x4xf32>
    %114 = vector.shape_cast %111 : vector<8x16x4xf32> to vector<1x8x16x4xf32>
    tpu.vector_store %arg9[%c0_73, %c0_74, %c0_75, %c0_76], %114 {strides = array<i32>} : memref<1x8x16x4xf32, #tpu.memory_space<vmem>>, vector<1x8x16x4xf32>,
    return
  }
  func.func @transform_0(%arg0: i32, %arg1: i32) -> (i32, i32, i32, i32) {
    %c0_i32 = arith.constant 0 : i32
    %c0_i32_0 = arith.constant 0 : i32
    %c0_i32_1 = arith.constant 0 : i32
    %c0_i32_2 = arith.constant 0 : i32
    return %arg0, %c0_i32, %c0_i32_0, %c0_i32_1 : i32, i32, i32, i32
  }
  func.func @transform_1(%arg0: i32, %arg1: i32) -> (i32, i32) {
    %c0_i32 = arith.constant 0 : i32
    %c0_i32_0 = arith.constant 0 : i32
    %c0_i32_1 = arith.constant 0 : i32
    return %c0_i32, %c0_i32_0 : i32, i32
  }
  func.func @transform_2(%arg0: i32, %arg1: i32) -> (i32, i32) {
    %c0_i32 = arith.constant 0 : i32
    %c0_i32_0 = arith.constant 0 : i32
    %c0_i32_1 = arith.constant 0 : i32
    return %c0_i32, %c0_i32_0 : i32, i32
  }
  func.func @transform_3(%arg0: i32, %arg1: i32) -> (i32, i32) {
    %c0_i32 = arith.constant 0 : i32
    %c0_i32_0 = arith.constant 0 : i32
    %c0_i32_1 = arith.constant 0 : i32
    return %c0_i32, %c0_i32_0 : i32, i32
  }
  func.func @transform_4(%arg0: i32, %arg1: i32) -> (i32, i32) {
    %c0_i32 = arith.constant 0 : i32
    %c0_i32_0 = arith.constant 0 : i32
    %c0_i32_1 = arith.constant 0 : i32
    return %c0_i32, %c0_i32_0 : i32, i32
  }
  func.func @transform_5(%arg0: i32, %arg1: i32) -> (i32, i32) {
    %c0_i32 = arith.constant 0 : i32
    %c0_i32_0 = arith.constant 0 : i32
    %c0_i32_1 = arith.constant 0 : i32
    return %c0_i32, %c0_i32_0 : i32, i32
  }
  func.func @transform_6(%arg0: i32, %arg1: i32) -> (i32, i32) {
    %c0_i32 = arith.constant 0 : i32
    %c0_i32_0 = arith.constant 0 : i32
    %c0_i32_1 = arith.constant 0 : i32
    return %c0_i32, %c0_i32_0 : i32, i32
  }
  func.func @transform_7(%arg0: i32, %arg1: i32) -> (i32, i32, i32, i32) {
    %c0_i32 = arith.constant 0 : i32
    %c0_i32_0 = arith.constant 0 : i32
    %c0_i32_1 = arith.constant 0 : i32
    return %arg0, %arg1, %c0_i32, %c0_i32_0 : i32, i32, i32, i32
  }
}

</mosaic_0001>

<bundles_post_ra>
// kernel: tpu_custom_call.1
= control target key start
LH: loop header
LB: loop body
LE: loop exit
PB: predicated region body
PF: predicated region fallthrough
CT: control target
= control target key end

     0   :  { %s2253_s24 = smov 0   ;;  %s2255_s25 = smov 0   ;;  %s3593_s0 = inlined_call_operand.vmem [shape: f32[2,16,16,4], index: 0, kind: input, shape index: {}]   ;;  %s3594_s1 = inlined_call_operand.vmem [shape: f32[4,32], index: 1, kind: input, shape index: {}]   ;;  %s3595_s2 = inlined_call_operand.vmem [shape: f32[1,32], index: 2, kind: input, shape index: {}]   ;;  %s3596_s3 = inlined_call_operand.vmem [shape: f32[9,32], index: 3, kind: input, shape index: {}]   ;;  %s3597_s4 = inlined_call_operand.vmem [shape: f32[1,32], index: 4, kind: input, shape index: {}]   ;;  %s3598_s5 = inlined_call_operand.vmem [shape: f32[32,4], index: 5, kind: input, shape index: {}]   ;;  %s3599_s6 = inlined_call_operand.vmem [shape: f32[1,4], index: 6, kind: input, shape index: {}]   ;;  %s3600_s7 = inlined_call_operand.vmem [shape: f32[2,16,16,4], index: 7, kind: output, shape index: {}]  }
   0x1   :  { %s2257_s26 = smov 0   ;;  %s2259_s27 = smov 0  }
   0x2   :  { %s2261_s28 = smov 0  }
   0x3 LB: > { %s26_s29 = sadd.s32 1, %s2202_s26  ;;  %s29_s30 = sadd.s32 1, %s2206_s27  ;;  %s2210_s28 = sphi %s2261_s28, %s17_s28   ;;  %s2206_s27 = sphi %s2259_s27, %s3638_s27   ;;  %s2202_s26 = sphi %s2257_s26, %s3637_s26   ;;  %s2198_s25 = sphi %s2255_s25, %s3636_s25   ;;  %s2194_s24 = sphi %s2253_s24, %s3635_s24  }
   0x4   : > { %p27_p0 = scmp.ge.s32.totalorder %s26_s29, 2  ;;  %p2003_p1 = scmp.ge.s32.totalorder %s2210_s28, 1 }
   0x5   : > { %p251_p2 = scmp.lt.s32.totalorder %s2210_s28, 5 }
   0x6   : > { %s3640_s29 = smov (%p27_p0, %s26_s29), 0  ;;  %s3642_s30 = smov (!%p27_p0, %s29_s30), %s2206_s27 }
   0x7   : > { %p252_p3 = pnand %p2003_p1, %p251_p2  ;;  %p31_p4 = scmp.ge.s32.totalorder %s3642_s30, 2 }
   0x8   : > { %p288_p5 = scmp.lt.s32.totalorder (!%p252_p3), %s2198_s25, 1  ;;  %s2071_s10 = sshll.u32 (!%p252_p3), %s2194_s24, 7 }
   0x9   : > { %s3644_s30 = smov (%p31_p4, %s3642_s30), 0  ;;  %255 = sbr.rel (%p252_p3) target bundleno = 601 (0x259), region = 48 }
   0xa   : > { %s2290_s11 = sshll.u32 (!%p252_p3), %s2194_s24, 3 }
   0xb   : > { %p296_p6 = scmp.lt.s32.totalorder (!%p252_p3), %s2290_s11, 15  ;;  %s2294_s12 = sadd.s32 (!%p252_p3), 4294967295, %s2290_s11 }
   0xc   : > { %p324_p7 = scmp.gt.s32.totalorder (!%p252_p3), %s2294_s12, 0 }
   0xe   : > { %v337_v0 = vld [vmem:[%s3594_s1] sm:$0xf]  ;;  %vm403_vm0 = vcmask 1043456   ;;  %s3646_s25 = smov (!%p288_p5, %s2198_s25), 1  ;;  %vm342_vm1 = vcmask 31744   ;;  %vm585_vm2 = vcmask 253952   ;;  %v2369_v22 = vstv %s2294_s12 }
   0xf   : > { %2072 = vmatpush.msk.msra.mxu2 %vm403_vm0, %v337_v0  ;;  %2015 = vmatpush.msk.msra.mxu0 %vm403_vm0, %v337_v0  ;;  %s2070_s13 = sshll.u32 %s3646_s25, 8  ;;  %s2008_s18 = sshll.u32 %s3646_s25, 5  ;;  %v2212_v21 = vmov 0.0   ;;  %v489_v23 = vadd.s32 5, %v2369_v22  ;;  %v2375_v24 = vld [vmem:[%s3595_s2] ss:$0 sm:$0xff] }
  0x10   : > { %s2299_s16 = scalar_lea.vmem %s3593_s0, %s2070_s13  ;;  %s330_s25 = sadd.s32 8, %s2290_s11  ;;  %586 = vst.msk [vmem:[#allocation2] sm:$0x1] %vm585_vm2, %v2212_v21  ;;  %vm494_vm3 = vcmp.ge.s32.totalorder %v2369_v22, 0  ;;  %vm504_vm4 = vcmp.le.s32.totalorder %v2369_v22, 15  ;;  %vm564_vm8 = vcmask 261120  }
  0x11   : > { %s2303_s17 = scalar_lea.vmem %s2299_s16, %s2071_s10  ;;  %p331_p8 = scmp.lt.s32.totalorder %s330_s25, 15  ;;  %587 = vst.msk [vmem:[#allocation2 + $0x18] sm:$0x1] %vm585_vm2, %v2212_v21  ;;  %vm499_vm5 = vcmp.ge.s32.totalorder %v489_v23, 0  ;;  %vm509_vm6 = vcmp.le.s32.totalorder %v489_v23, 15  ;;  %vm2379_vm7 = vmand %vm494_vm3, %vm504_vm4  ;;  %v485_v36 = vadd.s32 1, %v2369_v22 }
  0x12   : > { %v315_v1 = vld [vmem:[%s2303_s17 + $0x40] sm:$0xff]  ;;  %s297_s19 = scalar_select %p296_p6, %s2290_s11, 15  ;;  %v316_v3 = vld [vmem:[%s2303_s17 + $0x48] sm:$0xff]  ;;  %v317_v5 = vld [vmem:[%s2303_s17 + $0x50] sm:$0xff]  ;;  %588 = vst.msk [vmem:[#allocation2 + $0x30] sm:$0x1] %vm585_vm2, %v2212_v21 }
  0x13   : > { %2026 = vmatmul.msk.f32.vlgmr.msra.gmra.mxu2 %vm342_vm1, %v315_v1  ;;  %s325_s20 = scalar_select %p324_p7, %s2294_s12, 0  ;;  %v307_v6 = vld [vmem:[%s2303_s17] sm:$0xff]  ;;  %v318_v7 = vld [vmem:[%s2303_s17 + $0x58] sm:$0xff]  ;;  %v308_v8 = vld [vmem:[%s2303_s17 + $0x8] sm:$0xff]  ;;  %589 = vst.msk [vmem:[#allocation2 + $0x48] sm:$0x1] %vm585_vm2, %v2212_v21 }
  0x14   : > { %s2007_s21 = sshll.u32 %s297_s19, 1  ;;  %v319_v9 = vld [vmem:[%s2303_s17 + $0x60] sm:$0xff]  ;;  %v309_v10 = vld [vmem:[%s2303_s17 + $0x10] sm:$0xff]  ;;  %v320_v11 = vld [vmem:[%s2303_s17 + $0x68] sm:$0xff]  ;;  %s3648_s25 = smov (!%p331_p8, %s330_s25), 15  ;;  %v490_v38 = vadd.s32 6, %v2369_v22 }
  0x15   : > { %s2309_s22 = sadd.s32 %s2008_s18, %s2007_s21  ;;  %s2013_s23 = sshll.u32 %s325_s20, 4  ;;  %v310_v12 = vld [vmem:[%s2303_s17 + $0x18] sm:$0xff]  ;;  %v321_v13 = vld [vmem:[%s2303_s17 + $0x70] sm:$0xff]  ;;  %v311_v14 = vld [vmem:[%s2303_s17 + $0x20] sm:$0xff]  ;;  %590 = vst.msk [vmem:[#allocation2 + $0x60] sm:$0x1] %vm585_vm2, %v2212_v21 }
  0x16   : > { %s327_s24 = scalar_lea.vmem %s2299_s16, %s2013_s23  ;;  %v322_v15 = vld [vmem:[%s2303_s17 + $0x78] sm:$0xff]  ;;  %s2014_s8 = sshll.u32 %s3648_s25, 4  ;;  %v312_v16 = vld [vmem:[%s2303_s17 + $0x28] sm:$0xff]  ;;  %v313_v18 = vld [vmem:[%s2303_s17 + $0x30] sm:$0xff]  ;;  %591 = vst.msk [vmem:[#allocation2 + $0x78] sm:$0x1] %vm585_vm2, %v2212_v21 }
  0x17   : > { %v328_v2 = vld [vmem:[%s327_s24] sm:$0xff]  ;;  %v329_v4 = vld [vmem:[%s327_s24 + $0x8] sm:$0xff]  ;;  %s334_s9 = scalar_lea.vmem %s2299_s16, %s2014_s8  ;;  %v314_v20 = vld [vmem:[%s2303_s17 + $0x38] sm:$0xff]  ;;  %592 = vst.msk [vmem:[#allocation2 + $0x90] sm:$0x1] %vm585_vm2, %v2212_v21  ;;  %vm495_vm10 = vcmp.ge.s32.totalorder %v485_v36, 0 }
  0x18   : > { %2016 = vmatmul.msk.f32.vlgmr.msra.gmra.mxu0 %vm342_vm1, %v328_v2  ;;  %v335_v17 = vld [vmem:[%s334_s9] sm:$0xff]  ;;  %v336_v19 = vld [vmem:[%s334_s9 + $0x8] sm:$0xff]  ;;  %593 = vst.msk [vmem:[#allocation2 + $0xa8] sm:$0x1] %vm585_vm2, %v2212_v21  ;;  %vm2384_vm9 = vmand %vm499_vm5, %vm509_vm6  ;;  %vm505_vm11 = vcmp.le.s32.totalorder %v485_v36, 15  ;;  %vm500_vm12 = vcmp.ge.s32.totalorder %v490_v38, 0 }
  0x19   : > { %594 = vst.msk [vmem:[#allocation2 + $0xc0] sm:$0x1] %vm585_vm2, %v2212_v21  ;;  %vm510_vm13 = vcmp.le.s32.totalorder %v490_v38, 15  ;;  %vm2405_vm14 = vmand %vm495_vm10, %vm505_vm11  ;;  %v2424_v50 = vld [vmem:[%s3596_s3] ss:$0 sm:$0xff]  ;;  %v486_v53 = vadd.s32 2, %v2369_v22 }
  0x1a   : > { %595 = vst.msk [vmem:[#allocation2 + $0xd8] sm:$0x1] %vm585_vm2, %v2212_v21  ;;  %vm2410_vm15 = vmand %vm500_vm12, %vm510_vm13  ;;  %v491_v56 = vadd.s32 7, %v2369_v22  ;;  %v2439_v61 = vld [vmem:[%s3597_s4] ss:$0 sm:$0xff]  ;;  %v492_v42 = vadd.s32 8, %v2369_v22 }
  0x1b   : > { %2027 = vmatmul.msk.f32.gmra.mxu2 %vm342_vm1, %v316_v3  ;;  %596 = vst.msk [vmem:[#allocation2 + $0x11] sm:$0x1] %vm585_vm2, %v2212_v21  ;;  %vm496_vm0 = vcmp.ge.s32.totalorder %v486_v53, 0  ;;  %v2446_v63 = vld [vmem:[%s3596_s3 + $0x1] ss:$0 sm:$0xff]  ;;  %s2009_s9 = sshll.u32 %s2309_s22, 3 }
  0x1c   : > { %597 = vst.msk [vmem:[#allocation2 + $0x29] sm:$0x1] %vm585_vm2, %v2212_v21  ;;  %vm501_vm3 = vcmp.ge.s32.totalorder %v491_v56, 0  ;;  %vm511_vm4 = vcmp.le.s32.totalorder %v491_v56, 15  ;;  %v2451_v0 = vld [vmem:[%s3596_s3 + $0x2] ss:$0 sm:$0xff]  ;;  %s3519_s14 = scalar_lea.vmem %s3600_s7, %s2009_s9 }
  0x1d   : > { %598 = vst.msk [vmem:[#allocation2 + $0x41] sm:$0x1] %vm585_vm2, %v2212_v21  ;;  %vm2464_vm6 = vmand %vm501_vm3, %vm511_vm4  ;;  %vm502_vm10 = vcmp.ge.s32.totalorder %v492_v42, 0  ;;  %vm512_vm11 = vcmp.le.s32.totalorder %v492_v42, 15 }
  0x1e   : > { %599 = vst.msk [vmem:[#allocation2 + $0x59] sm:$0x1] %vm585_vm2, %v2212_v21  ;;  %vm2547_vm13 = vmand %vm502_vm10, %vm512_vm11 }
  0x1f   : > { %600 = vst.msk [vmem:[#allocation2 + $0x71] sm:$0x1] %vm585_vm2, %v2212_v21 }
  0x20   : > { %2017 = vmatmul.msk.f32.gmra.mxu0 %vm342_vm1, %v329_v4  ;;  %601 = vst.msk [vmem:[#allocation2 + $0x89] sm:$0x1] %vm585_vm2, %v2212_v21 }
  0x21   : > { %602 = vst.msk [vmem:[#allocation2 + $0xa1] sm:$0x1] %vm585_vm2, %v2212_v21 }
  0x22   : > { %603 = vst.msk [vmem:[#allocation2 + $0xb9] sm:$0x1] %vm585_vm2, %v2212_v21 }
  0x23   : > { %2028 = vmatmul.msk.f32.gmra.mxu2 %vm342_vm1, %v317_v5  ;;  %604 = vst.msk [vmem:[#allocation2 + $0xd1] sm:$0x1] %vm585_vm2, %v2212_v21 }
  0x24   : > { %605 = vst.msk [vmem:[#allocation2 + $0xe9] sm:$0x1] %vm585_vm2, %v2212_v21  ;;  %vm506_vm2 = vcmp.le.s32.totalorder %v486_v53, 15 }
  0x25   : > { %vm2453_vm5 = vmand %vm496_vm0, %vm506_vm2 }
  0x28   : > { %2018 = vmatmul.msk.f32.gmra.mxu0 %vm342_vm1, %v307_v6  ;;  %v2461_v6 = vld [vmem:[%s3596_s3 + $0x3] ss:$0 sm:$0xff] }
  0x2b   : > { %2029 = vmatmul.msk.f32.gmra.mxu2 %vm342_vm1, %v318_v7 }
  0x30   : > { %2019 = vmatmul.msk.f32.gmra.mxu0 %vm342_vm1, %v308_v8 }
  0x33   : > { %2030 = vmatmul.msk.f32.gmra.mxu2 %vm342_vm1, %v319_v9 }
  0x38   : > { %2020 = vmatmul.msk.f32.gmra.mxu0 %vm342_vm1, %v309_v10  ;;  %v2542_v10 = vld [vmem:[%s3596_s3 + $0x8] ss:$0 sm:$0xff] }
  0x3b   : > { %2031 = vmatmul.msk.f32.gmra.mxu2 %vm342_vm1, %v320_v11 }
  0x40   : > { %2021 = vmatmul.msk.f32.gmra.mxu0 %vm342_vm1, %v310_v12 }
  0x43   : > { %2032 = vmatmul.msk.f32.gmra.mxu2 %vm342_vm1, %v321_v13 }
  0x48   : > { %2022 = vmatmul.msk.f32.gmra.mxu0 %vm342_vm1, %v311_v14 }
  0x4b   : > { %2033 = vmatmul.msk.f32.gmra.mxu2 %vm342_vm1, %v322_v15 }
  0x50   : > { %2023 = vmatmul.msk.f32.gmra.mxu0 %vm342_vm1, %v312_v16 }
  0x53   : > { %2034 = vmatmul.msk.f32.gmra.mxu2 %vm342_vm1, %v335_v17 }
  0x58   : > { %2024 = vmatmul.msk.f32.gmra.mxu0 %vm342_vm1, %v313_v18 }
  0x5b   : > { %2035 = vmatmul.msk.f32.gmra.mxu2 %vm342_vm1, %v336_v19 }
  0x60   : > { %2025 = vmatmul.msk.f32.gmra.mxu0 %vm342_vm1, %v314_v20 }
  0x95   : > { %v424_v25 = vpop.f32.mrf.mxu0 }
  0x96   : > { %v425_v27 = vadd.f32 %v2375_v24, %v424_v25  ;;  %v454_v28 = vpop.f32.mrf.mxu2 }
  0x97   : > { %v455_v30 = vadd.f32 %v2375_v24, %v454_v28  ;;  %v2488_v28 = vld [vmem:[%s3596_s3 + $0x5] ss:$0 sm:$0xff] }
  0x98   : > { %v544_v31 = vsel %vm2379_vm7, %v425_v27, 0.0  ;;  %v2483_v27 = vld [vmem:[%s3596_s3 + $0x4] ss:$0 sm:$0xff] }
  0x99   : > { %565 = vst.msk [vmem:[#allocation2 + $0x1] sm:$0xff] %vm564_vm8, %v544_v31  ;;  %v554_v32 = vsel %vm2384_vm9, %v455_v30, 0.0 }
  0x9a   : > { %575 = vst.msk [vmem:[#allocation2 + $0x79] sm:$0xff] %vm564_vm8, %v554_v32 }
  0x9d   : > { %v427_v33 = vpop.f32.mrf.mxu0 }
  0x9e   : > { %v428_v34 = vadd.f32 %v2375_v24, %v427_v33  ;;  %v457_v35 = vpop.f32.mrf.mxu2 }
  0x9f   : > { %v458_v37 = vadd.f32 %v2375_v24, %v457_v35  ;;  %v2495_v35 = vld [vmem:[%s3596_s3 + $0x6] ss:$0 sm:$0xff] }
  0xa0   : > { %v545_v39 = vsel %vm2379_vm7, %v428_v34, 0.0  ;;  %v606_v54 = vld [vmem:[#allocation2] sm:$0xff] }
  0xa1   : > { %566 = vst.msk [vmem:[#allocation2 + $0x9] sm:$0xff] %vm564_vm8, %v545_v39  ;;  %v555_v40 = vsel %vm2384_vm9, %v458_v37, 0.0  ;;  %v624_v60 = vmul.f32 %v2424_v50, %v606_v54  ;;  %v660_v1 = vld [vmem:[#allocation2 + $0x1] sm:$0xff]  ;;  %v487_v39 = vadd.s32 3, %v2369_v22  ;;  %v1769_v54 = vld [vmem:[%s3598_s5 + $0x18] sm:$0xff] }
  0xa2   : > { %576 = vst.msk [vmem:[#allocation2 + $0x81] sm:$0xff] %vm564_vm8, %v555_v40  ;;  %v678_v14 = vmul.f32 %v2446_v63, %v660_v1  ;;  %1834 = vmatpush.msra.mxu1 %v1769_v54  ;;  %2073 = vmatpush.msra.mxu3 %v1769_v54  ;;  %v1767_v1 = vld [vmem:[%s3598_s5 + $0x8] sm:$0xff] }
  0xa3   : > { %v644_v5 = vadd.f32 %v2439_v61, %v624_v60  ;;  %vm497_vm7 = vcmp.ge.s32.totalorder %v487_v39, 0  ;;  %vm507_vm9 = vcmp.le.s32.totalorder %v487_v39, 15 }
  0xa4   : > { %vm2532_vm12 = vmand %vm497_vm7, %vm507_vm9 }
  0xa5   : > { %v430_v41 = vpop.f32.mrf.mxu0  ;;  %v694_v19 = vadd.f32 %v678_v14, %v644_v5 }
  0xa6   : > { %v431_v43 = vadd.f32 %v2375_v24, %v430_v41  ;;  %v460_v44 = vpop.f32.mrf.mxu2 }
  0xa7   : > { %v461_v46 = vadd.f32 %v2375_v24, %v460_v44 }
  0xa8   : > { %v546_v47 = vsel %vm2405_vm14, %v431_v43, 0.0  ;;  %v607_v57 = vld [vmem:[#allocation2 + $0x8] sm:$0xff] }
  0xa9   : > { %567 = vst.msk [vmem:[#allocation2 + $0x19] sm:$0xff] %vm564_vm8, %v546_v47  ;;  %v556_v48 = vsel %vm2410_vm15, %v461_v46, 0.0  ;;  %v625_v62 = vmul.f32 %v2424_v50, %v607_v57  ;;  %v710_v2 = vld [vmem:[#allocation2 + $0x2] sm:$0xff]  ;;  %v711_v21 = vld [vmem:[#allocation2 + $0xa] sm:$0xff] }
  0xaa   : > { %577 = vst.msk [vmem:[#allocation2 + $0x91] sm:$0xff] %vm564_vm8, %v556_v48  ;;  %v661_v7 = vld [vmem:[#allocation2 + $0x9] sm:$0xff]  ;;  %v728_v15 = vmul.f32 %v2451_v0, %v710_v2  ;;  %v729_v31 = vmul.f32 %v2451_v0, %v711_v21 }
  0xab   : > { %v645_v12 = vadd.f32 %v2439_v61, %v625_v62  ;;  %v679_v17 = vmul.f32 %v2446_v63, %v661_v7 }
  0xac   : > { %v744_v26 = vadd.f32 %v728_v15, %v694_v19  ;;  %v1766_v15 = vld [vmem:[%s3598_s5] sm:$0xff] }
  0xad   : > { %v433_v49 = vpop.f32.mrf.mxu0  ;;  %v695_v25 = vadd.f32 %v679_v17, %v645_v12 }
  0xae   : > { %v434_v51 = vadd.f32 %v2375_v24, %v433_v49  ;;  %v463_v52 = vpop.f32.mrf.mxu2 }
  0xaf   : > { %v464_v55 = vadd.f32 %v2375_v24, %v463_v52  ;;  %v745_v40 = vadd.f32 %v729_v31, %v695_v25 }
  0xb0   : > { %v547_v58 = vsel %vm2405_vm14, %v434_v51, 0.0  ;;  %v761_v11 = vld [vmem:[#allocation2 + $0x18] sm:$0xff] }
  0xb1   : > { %568 = vst.msk [vmem:[#allocation2 + $0x21] sm:$0xff] %vm564_vm8, %v547_v58  ;;  %v557_v59 = vsel %vm2410_vm15, %v464_v55, 0.0  ;;  %v779_v20 = vmul.f32 %v2461_v6, %v761_v11  ;;  %v811_v29 = vld [vmem:[#allocation2 + $0x19] sm:$0xff]  ;;  %v626_v36 = vmul.f32 %v2424_v50, %v761_v11  ;;  %v1768_v55 = vld [vmem:[%s3598_s5 + $0x10] sm:$0xff] }
  0xb2   : > { %578 = vst.msk [vmem:[#allocation2 + $0x99] sm:$0xff] %vm564_vm8, %v557_v59  ;;  %v829_v43 = vmul.f32 %v2483_v27, %v811_v29  ;;  %v2523_v59 = vld [vmem:[%s3596_s3 + $0x7] ss:$0 sm:$0xff]  ;;  %v680_v62 = vmul.f32 %v2446_v63, %v811_v29  ;;  %1835 = vmatpush.msra.mxu1 %v1768_v55  ;;  %2074 = vmatpush.msra.mxu3 %v1768_v55 }
  0xb3   : > { %v795_v34 = vadd.f32 %v779_v20, %v744_v26  ;;  %v646_v53 = vadd.f32 %v2439_v61, %v626_v36  ;;  %v2559_v20 = vadd.s32 9, %v2369_v22 }
  0xb4   : > { %1836 = vmatpush.msra.mxu1 %v1767_v1  ;;  %2075 = vmatpush.msra.mxu3 %v1767_v1 }
  0xb5   : > { %v436_v3 = vpop.f32.mrf.mxu0  ;;  %v845_v51 = vadd.f32 %v829_v43, %v795_v34  ;;  %v696_v11 = vadd.f32 %v680_v62, %v646_v53  ;;  %vm503_vm0 = vcmp.ge.s32.totalorder %v2559_v20, 0  ;;  %vm513_vm2 = vcmp.le.s32.totalorder %v2559_v20, 15 }
  0xb6   : > { %v437_v8 = vadd.f32 %v2375_v24, %v436_v3  ;;  %v466_v9 = vpop.f32.mrf.mxu2  ;;  %1837 = vmatpush.msra.mxu1 %v1766_v15  ;;  %2076 = vmatpush.msra.mxu3 %v1766_v15  ;;  %vm2640_vm4 = vmand %vm503_vm0, %vm513_vm2 }
  0xb7   : > { %v467_v13 = vadd.f32 %v2375_v24, %v466_v9 }
  0xb8   : > { %v548_v16 = vsel %vm2453_vm5, %v437_v8, 0.0  ;;  %v762_v23 = vld [vmem:[#allocation2 + $0x20] sm:$0xff]  ;;  %v2537_v8 = vadd.s32 4, %v2369_v22 }
  0xb9   : > { %569 = vst.msk [vmem:[#allocation2 + $0x31] sm:$0xff] %vm564_vm8, %v548_v16  ;;  %v558_v18 = vsel %vm2464_vm6, %v467_v13, 0.0  ;;  %v861_v30 = vld [vmem:[#allocation2 + $0x1a] sm:$0xff]  ;;  %v780_v32 = vmul.f32 %v2461_v6, %v762_v23  ;;  %v627_v57 = vmul.f32 %v2424_v50, %v762_v23  ;;  %v862_v60 = vld [vmem:[#allocation2 + $0x22] sm:$0xff] }
  0xba   : > { %579 = vst.msk [vmem:[#allocation2 + $0xa9] sm:$0xff] %vm564_vm8, %v558_v18  ;;  %v879_v44 = vmul.f32 %v2488_v28, %v861_v30  ;;  %v812_v45 = vld [vmem:[#allocation2 + $0x21] sm:$0xff]  ;;  %v730_v4 = vmul.f32 %v2451_v0, %v861_v30  ;;  %v880_v16 = vmul.f32 %v2488_v28, %v862_v60  ;;  %vm498_vm14 = vcmp.ge.s32.totalorder %v2537_v8, 0 }
  0xbb   : > { %v796_v48 = vadd.f32 %v780_v32, %v745_v40  ;;  %v830_v56 = vmul.f32 %v2483_v27, %v812_v45  ;;  %v647_v18 = vadd.f32 %v2439_v61, %v627_v57  ;;  %vm508_vm15 = vcmp.le.s32.totalorder %v2537_v8, 15 }
  0xbc   : > { %v895_v58 = vadd.f32 %v879_v44, %v845_v51  ;;  %v746_v32 = vadd.f32 %v730_v4, %v696_v11  ;;  %vm2626_vm3 = vmand %vm498_vm14, %vm508_vm15 }
  0xbd   : > { %v439_v33 = vpop.f32.mrf.mxu0  ;;  %v846_v3 = vadd.f32 %v830_v56, %v796_v48 }
  0xbe   : > { %v440_v37 = vadd.f32 %v2375_v24, %v439_v33  ;;  %v469_v38 = vpop.f32.mrf.mxu2  ;;  %v681_v33 = vmul.f32 %v2446_v63, %v812_v45 }
  0xbf   : > { %v470_v41 = vadd.f32 %v2375_v24, %v469_v38  ;;  %v896_v29 = vadd.f32 %v880_v16, %v846_v3 }
  0xc0   : > { %v549_v46 = vsel %vm2453_vm5, %v440_v37, 0.0  ;;  %v912_v47 = vld [vmem:[#allocation2 + $0x30] sm:$0xff]  ;;  %v697_v40 = vadd.f32 %v681_v33, %v647_v18 }
  0xc1   : > { %570 = vst.msk [vmem:[#allocation2 + $0x39] sm:$0xff] %vm564_vm8, %v549_v46  ;;  %v559_v49 = vsel %vm2464_vm6, %v470_v41, 0.0  ;;  %v930_v52 = vmul.f32 %v2495_v35, %v912_v47  ;;  %v962_v2 = vld [vmem:[#allocation2 + $0x31] sm:$0xff]  ;;  %v781_v17 = vmul.f32 %v2461_v6, %v912_v47  ;;  %v628_v23 = vmul.f32 %v2424_v50, %v912_v47 }
  0xc2   : > { %580 = vst.msk [vmem:[#allocation2 + $0xb1] sm:$0xff] %vm564_vm8, %v559_v49  ;;  %v980_v21 = vmul.f32 %v2523_v59, %v962_v2  ;;  %v831_v45 = vmul.f32 %v2483_v27, %v962_v2  ;;  %v731_v46 = vmul.f32 %v2451_v0, %v862_v60  ;;  %v682_v53 = vmul.f32 %v2446_v63, %v962_v2 }
  0xc3   : > { %v946_v9 = vadd.f32 %v930_v52, %v895_v58  ;;  %v797_v39 = vadd.f32 %v781_v17, %v746_v32  ;;  %v648_v44 = vadd.f32 %v2439_v61, %v628_v23 }
  0xc4   : > { %v747_v58 = vadd.f32 %v731_v46, %v697_v40 }
  0xc5   : > { %v442_v5 = vpop.f32.mrf.mxu0  ;;  %v996_v34 = vadd.f32 %v980_v21, %v946_v9  ;;  %v847_v56 = vadd.f32 %v831_v45, %v797_v39  ;;  %v698_v3 = vadd.f32 %v682_v53, %v648_v44 }
  0xc6   : > { %v443_v12 = vadd.f32 %v2375_v24, %v442_v5  ;;  %v472_v13 = vpop.f32.mrf.mxu2 }
  0xc7   : > { %v473_v19 = vadd.f32 %v2375_v24, %v472_v13 }
  0xc8   : > { %v550_v25 = vsel %vm2532_vm12, %v443_v12, 0.0  ;;  %v1012_v26 = vld [vmem:[#allocation2 + $0x32] sm:$0xff]  ;;  %v1013_v38 = vld [vmem:[#allocation2 + $0x3a] sm:$0xff] }
  0xc9   : > { %v913_v30 = vld [vmem:[#allocation2 + $0x38] sm:$0xff]  ;;  %571 = vst.msk [vmem:[#allocation2 + $0x49] sm:$0xff] %vm564_vm8, %v550_v25  ;;  %v560_v22 = vsel %vm2547_vm13, %v473_v19, 0.0  ;;  %v1030_v36 = vmul.f32 %v2542_v10, %v1012_v26  ;;  %v1031_v52 = vmul.f32 %v2542_v10, %v1013_v38  ;;  %v881_v57 = vmul.f32 %v2488_v28, %v1012_v26 }
  0xca   : > { %v963_v31 = vld [vmem:[#allocation2 + $0x39] sm:$0xff]  ;;  %v931_v37 = vmul.f32 %v2495_v35, %v913_v30  ;;  %581 = vst.msk [vmem:[#allocation2 + $0xc1] sm:$0xff] %vm564_vm8, %v560_v22  ;;  %v782_v47 = vmul.f32 %v2461_v6, %v913_v30  ;;  %v732_v9 = vmul.f32 %v2451_v0, %v1012_v26  ;;  %v629_v11 = vmul.f32 %v2424_v50, %v913_v30 }
  0xcb   : > { %v1046_v41 = vadd.f32 %v1030_v36, %v996_v34  ;;  %v981_v43 = vmul.f32 %v2523_v59, %v963_v31  ;;  %v832_v16 = vmul.f32 %v2483_v27, %v963_v31  ;;  %v897_v7 = vadd.f32 %v881_v57, %v847_v56 }
  0xcc   : > { %v947_v42 = vadd.f32 %v931_v37, %v896_v29  ;;  %v798_v2 = vadd.f32 %v782_v47, %v747_v58  ;;  %v882_v18 = vmul.f32 %v2488_v28, %v1013_v38  ;;  %v2609_v19 = vmul.f32 %v2446_v63, %v963_v31 }
  0xcd   : > { %v445_v48 = vpop.f32.mrf.mxu0  ;;  %v2581_v49 = vmul.f32 0.70710677, %v1046_v41  ;;  %v2611_v21 = vmul.f32 0.5, %v1046_v41  ;;  %v748_v32 = vadd.f32 %v732_v9, %v698_v3  ;;  %v2620_v33 = vadd.f32 %v2439_v61, %v629_v11 }
  0xce   : > { %v997_v51 = vadd.f32 %v981_v43, %v947_v42  ;;  %v446_v54 = vadd.f32 %v2375_v24, %v445_v48  ;;  %v475_v55 = vpop.f32.mrf.mxu2  ;;  %v848_v30 = vadd.f32 %v832_v16, %v798_v2  ;;  %v2633_v39 = vmul.f32 %v2451_v0, %v1013_v38 }
  0xcf   : > { %v476_v62 = vadd.f32 %v2375_v24, %v475_v55  ;;  %v1094_v60 = vmul.f32 %v2581_v49, %v2581_v49 }
  0xd0   : > { %v1047_v1 = vadd.f32 %v1031_v52, %v997_v51  ;;  %v551_v4 = vsel %vm2532_vm12, %v446_v54, 0.0  ;;  %v2592_v5 = vld [vmem:[#allocation2 + $0x48] sm:$0xff]  ;;  %v898_v53 = vadd.f32 %v882_v18, %v848_v30 }
  0xd1   : > { %572 = vst.msk [vmem:[#allocation2 + $0x51] sm:$0xff] %vm564_vm8, %v551_v4  ;;  %v561_v12 = vsel %vm2547_vm13, %v476_v62, 0.0  ;;  %v2599_v13 = vmin.f32 %v1094_v60, 16.0  ;;  %v932_v17 = vmul.f32 %v2495_v35, %v2592_v5  ;;  %v2617_v26 = vld [vmem:[#allocation2 + $0x49] sm:$0xff]  ;;  %v783_v38 = vmul.f32 %v2461_v6, %v2592_v5 }
  0xd2   : > { %v2601_v15 = vmul.f32 0.70710677, %v1047_v1  ;;  %582 = vst.msk [vmem:[#allocation2 + $0xc9] sm:$0xff] %vm564_vm8, %v561_v12  ;;  %v2644_v42 = vmul.f32 0.5, %v1047_v1  ;;  %v982_v43 = vmul.f32 %v2523_v59, %v2617_v26  ;;  %v833_v2 = vmul.f32 %v2483_v27, %v2617_v26 }
  0xd3   : > { %v1096_v14 = vmul.f32 2.1237322e-06, %v2599_v13  ;;  %v1107_v23 = vmul.f32 3.8918573e-05, %v2599_v13  ;;  %v948_v29 = vadd.f32 %v932_v17, %v897_v7  ;;  %v799_v16 = vadd.f32 %v783_v38, %v748_v32 }
  0xd4   : > { %v1134_v25 = vmul.f32 %v2601_v15, %v2601_v15 }
  0xd5   : > { %v448_v22 = vpop.f32.mrf.mxu0  ;;  %v1097_v34 = vadd.f32 0.00028619796, %v1096_v14  ;;  %v1108_v36 = vadd.f32 0.001143296, %v1107_v23  ;;  %v998_v51 = vadd.f32 %v982_v43, %v948_v29  ;;  %v630_v14 = vmul.f32 %v2424_v50, %v2592_v5 }
  0xd6   : > { %v2630_v37 = vmin.f32 %v1134_v25, 16.0  ;;  %v449_v40 = vadd.f32 %v2375_v24, %v448_v22  ;;  %v478_v41 = vpop.f32.mrf.mxu2  ;;  %v849_v8 = vadd.f32 %v833_v2, %v799_v16 }
  0xd7   : > { %v479_v44 = vadd.f32 %v2375_v24, %v478_v41  ;;  %v1098_v45 = vmul.f32 %v1097_v34, %v2599_v13  ;;  %v1109_v46 = vmul.f32 %v1108_v36, %v2599_v13  ;;  %v650_v16 = vadd.f32 %v2439_v61, %v630_v14 }
  0xd8   : > { %v1136_v20 = vmul.f32 2.1237322e-06, %v2630_v37  ;;  %v552_v47 = vsel %vm2626_vm3, %v449_v40, 0.0  ;;  %v1147_v48 = vmul.f32 3.8918573e-05, %v2630_v37  ;;  %v2657_v52 = vld [vmem:[#allocation2 + $0x4a] sm:$0xff] }
  0xd9   : > { %v2659_v54 = vld [vmem:[#allocation2 + $0x50] sm:$0xff]  ;;  %573 = vst.msk [vmem:[#allocation2 + $0x61] sm:$0xff] %vm564_vm8, %v552_v47  ;;  %v562_v56 = vsel %vm2640_vm4, %v479_v44, 0.0  ;;  %v1099_v57 = vadd.f32 0.0036580483, %v1098_v45  ;;  %v1032_v62 = vmul.f32 %v2542_v10, %v2657_v52 }
  0xda   : > { %v2661_v55 = vld [vmem:[#allocation2 + $0x51] sm:$0xff]  ;;  %v1110_v58 = vadd.f32 0.014752088, %v1109_v46  ;;  %583 = vst.msk [vmem:[#allocation2 + $0xd9] sm:$0xff] %vm564_vm8, %v562_v56  ;;  %v1137_v60 = vadd.f32 0.00028619796, %v1136_v20  ;;  %v933_v3 = vmul.f32 %v2495_v35, %v2659_v54 }
  0xdb   : > { %v1148_v1 = vadd.f32 0.001143296, %v1147_v48  ;;  %v2671_v4 = vld [vmem:[#allocation2 + $0x52] sm:$0xff]  ;;  %v1100_v9 = vmul.f32 %v1099_v57, %v2599_v13  ;;  %v2677_v12 = vadd.f32 %v1032_v62, %v998_v51  ;;  %v983_v30 = vmul.f32 %v2523_v59, %v2661_v55 }
  0xdc   : > { %v1111_v11 = vmul.f32 %v1110_v58, %v2599_v13  ;;  %v1138_v7 = vmul.f32 %v1137_v60, %v2630_v37  ;;  %v949_v18 = vadd.f32 %v933_v3, %v898_v53  ;;  %v1033_v22 = vmul.f32 %v2542_v10, %v2671_v4 }
  0xdd   : > { %v1149_v17 = vmul.f32 %v1148_v1, %v2630_v37  ;;  %v451_v23 = vpop.f32.mrf.mxu0  ;;  %v1101_v25 = vadd.f32 0.05243302, %v1100_v9  ;;  %v2689_v41 = vmul.f32 0.70710677, %v2677_v12  ;;  %v699_v58 = vadd.f32 %v2609_v19, %v2620_v33 }
  0xde   : > { %v1112_v29 = vadd.f32 0.112945676, %v1111_v11  ;;  %v452_v34 = vadd.f32 %v2375_v24, %v451_v23  ;;  %v481_v32 = vpop.f32.mrf.mxu2  ;;  %v1139_v36 = vadd.f32 0.0036580483, %v1138_v7  ;;  %v999_v44 = vadd.f32 %v983_v30, %v949_v18 }
  0xdf   : > { %v1150_v40 = vadd.f32 0.014752088, %v1149_v17  ;;  %v482_v43 = vadd.f32 %v2375_v24, %v481_v32  ;;  %v1102_v5 = vmul.f32 %v1101_v25, %v2599_v13  ;;  %v1174_v47 = vmul.f32 %v2689_v41, %v2689_v41 }
  0xe0   : > { %v1113_v38 = vmul.f32 %v1112_v29, %v2599_v13  ;;  %v553_v45 = vsel %vm2626_vm3, %v452_v34, 0.0  ;;  %v1140_v46 = vmul.f32 %v1139_v36, %v2630_v37  ;;  %v2703_v53 = vadd.f32 %v1033_v22, %v999_v44  ;;  %v2716_v3 = vld [vmem:[#allocation2 + $0x60] sm:$0xff] }
  0xe1   : > { %v1151_v20 = vmul.f32 %v1150_v40, %v2630_v37  ;;  %574 = vst.msk [vmem:[#allocation2 + $0x69] sm:$0xff] %vm564_vm8, %v553_v45  ;;  %v563_v24 = vsel %vm2640_vm4, %v482_v43, 0.0  ;;  %v1103_v48 = vadd.f32 0.18741608, %v1102_v5  ;;  %v2706_v57 = vmin.f32 %v1174_v47, 16.0 }
  0xe2   : > { %v1114_v51 = vadd.f32 0.4994258, %v1113_v38  ;;  %584 = vst.msk [vmem:[#allocation2 + $0xe1] sm:$0xff] %vm564_vm8, %v563_v24  ;;  %v1141_v31 = vadd.f32 0.05243302, %v1140_v46  ;;  %v883_v1 = vmul.f32 %v2488_v28, %v2657_v52  ;;  %v2732_v30 = vadd.f32 %v2633_v39, %v699_v58  ;;  %v2742_v38 = vld [vmem:[#allocation2 + $0x61] sm:$0xff] }
  0xe3   : > { %v1152_v56 = vadd.f32 0.112945676, %v1151_v20  ;;  %v2712_v60 = vmul.f32 0.70710677, %v2703_v53  ;;  %v1104_v9 = vmul.f32 %v1103_v48, %v2599_v13  ;;  %v1176_v17 = vmul.f32 2.1237322e-06, %v2706_v57 }
  0xe4   : > { %v1115_v62 = vmul.f32 %v1114_v51, %v2599_v13  ;;  %v1142_v11 = vmul.f32 %v1141_v31, %v2630_v37  ;;  %v1187_v33 = vmul.f32 3.8918573e-05, %v2706_v57  ;;  %v934_v13 = vmul.f32 %v2495_v35, %v2716_v3 }
  0xe5   : > { %v1153_v7 = vmul.f32 %v1152_v56, %v2630_v37  ;;  %v1214_v2 = vmul.f32 %v2712_v60, %v2712_v60  ;;  %v1177_v25 = vadd.f32 0.00028619796, %v1176_v17  ;;  %v899_v29 = vadd.f32 %v883_v1, %v849_v8 }
  0xe6   : > { %v2722_v19 = vadd.f32 1.0, %v1115_v62  ;;  %v1143_v18 = vadd.f32 0.18741608, %v1142_v11  ;;  %v684_v22 = vmul.f32 %v2446_v63, %v2617_v26  ;;  %v1105_v34 = vadd.f32 1.1283791, %v1104_v9 }
  0xe7   : > { %v1154_v23 = vadd.f32 0.4994258, %v1153_v7  ;;  %v1178_v36 = vmul.f32 %v1177_v25, %v2706_v57  ;;  %v1188_v43 = vadd.f32 0.001143296, %v1187_v33  ;;  %v2740_v5 = vmin.f32 %v1214_v2, 16.0 }
  0xe8   : > { %2130 = vrcp.f32 %v2722_v19  ;;  %v1144_v32 = vmul.f32 %v1143_v18, %v2630_v37  ;;  %v1126_v40 = vand.u32 2147483647, %v2722_v19  ;;  %v2744_v44 = vadd.f32 %v684_v22, %v650_v16  ;;  %v2760_v1 = vld [vmem:[#allocation2 + $0x62] sm:$0xff] }
  0xe9   : > { %v1155_v14 = vmul.f32 %v1154_v23, %v2630_v37  ;;  %v1128_v39 = vand.u32 2147483648, %v2722_v19  ;;  %v1179_v26 = vadd.f32 0.0036580483, %v1178_v36  ;;  %v950_v46 = vadd.f32 %v934_v13, %v899_v29 }
  0xea   : > { %v1145_v20 = vadd.f32 1.1283791, %v1144_v32  ;;  %v1189_v37 = vmul.f32 %v1188_v43, %v2706_v57  ;;  %v1216_v47 = vmul.f32 2.1237322e-06, %v2740_v5  ;;  %v1227_v24 = vmul.f32 3.8918573e-05, %v2740_v5 }
  0xeb   : > { %v2747_v45 = vadd.f32 1.0, %v1155_v14  ;;  %v1106_v48 = vmul.f32 %v1105_v34, %v2581_v49  ;;  %v984_v51 = vmul.f32 %v2523_v59, %v2742_v38  ;;  %v784_v31 = vmul.f32 %v2461_v6, %v2659_v54 }
  0xec   : > { %vm1122_vm5 = vweird.f32 %v2722_v19  ;;  %v1180_v58 = vmul.f32 %v1179_v26, %v2706_v57  ;;  %v1190_v62 = vadd.f32 0.014752088, %v1189_v37  ;;  %v1217_v8 = vadd.f32 0.00028619796, %v1216_v47 }
  0xed   : > { %2132 = vrcp.f32 %v2747_v45  ;;  %vm2763_vm6 = vcmp.eq.f32.partialorder %v1126_v40, 8.507059e+37  ;;  %v1129_v11 = vor.u32 1.1754944e-38, %v1128_v39  ;;  %v1228_v7 = vadd.f32 0.001143296, %v1227_v24 }
  0xee   : > { %v2131_v56 = vpop.eup %2130  ;;  %v1000_v17 = vadd.f32 %v984_v51, %v950_v46  ;;  %v1146_v33 = vmul.f32 %v1145_v20, %v2601_v15  ;;  %v1181_v2 = vadd.f32 0.05243302, %v1180_v58  ;;  %v1191_v16 = vmul.f32 %v1190_v62, %v2706_v57 }
  0xef   : > { %v1118_v9 = vmul.f32 %v2131_v56, %v2722_v19  ;;  %v1218_v18 = vmul.f32 %v1217_v8, %v2740_v5  ;;  %v1166_v25 = vand.u32 2147483647, %v2747_v45  ;;  %v1229_v13 = vmul.f32 %v1228_v7, %v2740_v5 }
  0xf0   : > { %v1034_v29 = vmul.f32 %v2542_v10, %v2760_v1  ;;  %vm1162_vm7 = vweird.f32 %v2747_v45  ;;  %v1182_v22 = vmul.f32 %v1181_v2, %v2706_v57  ;;  %v1192_v34 = vadd.f32 0.112945676, %v1191_v16 }
  0xf1   : > { %v1119_v23 = vsub.f32 1.0, %v1118_v9  ;;  %v1219_v32 = vadd.f32 0.0036580483, %v1218_v18  ;;  %vm1123_vm9 = vweird.f32 %v2131_v56  ;;  %v1230_v36 = vadd.f32 0.014752088, %v1229_v13 }
  0xf2   : > { %v2776_v40 = vadd.f32 %v1034_v29, %v1000_v17  ;;  %v1168_v39 = vand.u32 2147483648, %v2747_v45  ;;  %v1183_v26 = vadd.f32 0.18741608, %v1182_v22  ;;  %v1193_v46 = vmul.f32 %v1192_v34, %v2706_v57  ;;  %vm1124_vm11 = vmor %vm1122_vm5, %vm1123_vm9 }
  0xf3   : > { %v2133_v15 = vpop.eup %2132  ;;  %v1120_v14 = vmul.f32 %v2131_v56, %v1119_v23  ;;  %vm2781_vm10 = vcmp.eq.f32.partialorder %v1166_v25, 8.507059e+37  ;;  %v1220_v47 = vmul.f32 %v1219_v32, %v2740_v5  ;;  %v1231_v24 = vmul.f32 %v1230_v36, %v2740_v5 }
  0xf4   : > { %v1158_v43 = vmul.f32 %v2133_v15, %v2747_v45  ;;  %v1194_v58 = vadd.f32 0.4994258, %v1193_v46  ;;  %v2790_v62 = vmul.f32 0.70710677, %v2776_v40  ;;  %v800_v8 = vadd.f32 %v784_v31, %v2732_v30  ;;  %v2816_v45 = vld [vmem:[#allocation2 + $0x68] sm:$0xff] }
  0xf5   : > { %v1121_v20 = vadd.f32 %v2131_v56, %v1120_v14  ;;  %vm1163_vm12 = vweird.f32 %v2133_v15  ;;  %v1221_v7 = vadd.f32 0.05243302, %v1220_v47  ;;  %v1232_v17 = vadd.f32 0.112945676, %v1231_v24 }
  0xf6   : > { %v1159_v51 = vsub.f32 1.0, %v1158_v43  ;;  %v1184_v18 = vmul.f32 %v1183_v26, %v2706_v57  ;;  %v1195_v19 = vmul.f32 %v1194_v58, %v2706_v57  ;;  %v1254_v30 = vmul.f32 %v2790_v62, %v2790_v62  ;;  %vm1164_vm13 = vmor %vm1162_vm7, %vm1163_vm12 }
  0xf7   : > { %v1125_v9 = vsel %vm1124_vm11, %v2131_v56, %v1121_v20  ;;  %v1222_v25 = vmul.f32 %v1221_v7, %v2740_v5  ;;  %v1233_v13 = vmul.f32 %v1232_v17, %v2740_v5  ;;  %v1169_v56 = vor.u32 1.1754944e-38, %v1168_v39 }
  0xf8   : > { %v1130_v2 = vsel %vm2763_vm6, %v1129_v11, %v1125_v9  ;;  %v1160_v16 = vmul.f32 %v2133_v15, %v1159_v51  ;;  %v2801_v29 = vadd.f32 1.0, %v1195_v19  ;;  %v834_v49 = vmul.f32 %v2483_v27, %v2661_v55 }
  0xf9   : > { %v1131_v23 = vmul.f32 %v1130_v2, %v1106_v48  ;;  %v1223_v57 = vadd.f32 0.18741608, %v1222_v25  ;;  %v1234_v48 = vadd.f32 0.4994258, %v1233_v13  ;;  %v2808_v22 = vmin.f32 %v1254_v30, 16.0 }
  0xfa   : > { %v1161_v31 = vadd.f32 %v2133_v15, %v1160_v16  ;;  %2134 = vrcp.f32 %v2801_v29  ;;  %v850_v32 = vadd.f32 %v834_v49, %v800_v8  ;;  %v884_v14 = vmul.f32 %v2488_v28, %v2671_v4  ;;  %v2833_v16 = vld [vmem:[#allocation2 + $0x69] sm:$0xff] }
  0xfb   : > { %v2036_v11 = vclamps-f32 %v1131_v23, 1.0  ;;  %v1185_v39 = vadd.f32 1.1283791, %v1184_v18  ;;  %v1224_v26 = vmul.f32 %v1223_v57, %v2740_v5  ;;  %v1208_v20 = vand.u32 2147483648, %v2801_v29  ;;  %v2835_v18 = vld [vmem:[#allocation2 + $0x6a] sm:$0xff] }
  0xfc   : > { %v1165_v34 = vsel %vm1164_vm13, %v2133_v15, %v1161_v31  ;;  %v1235_v15 = vmul.f32 %v1234_v48, %v2740_v5  ;;  %v1256_v47 = vmul.f32 2.1237322e-06, %v2808_v22  ;;  %v1206_v51 = vand.u32 2147483647, %v2801_v29 }
  0xfd   : > { %v1734_v36 = vadd.f32 1.0, %v2036_v11  ;;  %v1170_v43 = vsel %vm2781_vm10, %v1169_v56, %v1165_v34  ;;  %v1225_v58 = vadd.f32 1.1283791, %v1224_v26  ;;  %v1267_v37 = vmul.f32 3.8918573e-05, %v2808_v22 }
  0xfe   : > { %v1171_v46 = vmul.f32 %v1170_v43, %v1146_v33  ;;  %v2824_v9 = vadd.f32 1.0, %v1235_v15  ;;  %v1257_v7 = vadd.f32 0.00028619796, %v1256_v47  ;;  %v935_v33 = vmul.f32 %v2495_v35, %v2816_v45 }
  0xff   : > { %v1750_v24 = vmul.f32 %v1734_v36, %v2611_v21  ;;  %v2830_v5 = vmul.f32 0.5, %v2677_v12  ;;  %v1186_v17 = vmul.f32 %v1185_v39, %v2689_v41  ;;  %v1268_v21 = vadd.f32 0.001143296, %v1267_v37 }
 0x100   : > { %v2037_v8 = vclamps-f32 %v1171_v46, 1.0  ;;  %v900_v2 = vadd.f32 %v884_v14, %v850_v32  ;;  %v2135_v19 = vpop.eup %2134  ;;  %vm1202_vm14 = vweird.f32 %v2801_v29  ;;  %v1209_v23 = vor.u32 1.1754944e-38, %v1208_v20 }
 0x101   : > { %2052 = vmatmul.msk.f32.vlgmr.msra.gmra.mxu1 %vm564_vm8, %v1750_v24  ;;  %v2839_v25 = vmul.f32 %v1225_v58, %v2712_v60  ;;  %2136 = vrcp.f32 %v2824_v9  ;;  %v1198_v12 = vmul.f32 %v2135_v19, %v2801_v29  ;;  %vm2843_vm15 = vcmp.eq.f32.partialorder %v1206_v51, 8.507059e+37 }
 0x102   : > { %v1735_v13 = vadd.f32 1.0, %v2037_v8  ;;  %v1248_v30 = vand.u32 2147483648, %v2824_v9  ;;  %v1258_v31 = vmul.f32 %v1257_v7, %v2808_v22  ;;  %v1269_v56 = vmul.f32 %v1268_v21, %v2808_v22 }
 0x103   : > { %v951_v49 = vadd.f32 %v935_v33, %v900_v2  ;;  %v985_v60 = vmul.f32 %v2523_v59, %v2833_v16  ;;  %v1035_v11 = vmul.f32 %v2542_v10, %v2835_v18  ;;  %v1199_v57 = vsub.f32 1.0, %v1198_v12  ;;  %v2876_v33 = vld [vmem:[#allocation2 + $0x78] sm:$0xff] }
 0x104   : > { %v1246_v48 = vand.u32 2147483647, %v2824_v9  ;;  %v1259_v34 = vadd.f32 0.0036580483, %v1258_v31  ;;  %v734_v32 = vmul.f32 %v2451_v0, %v2657_v52  ;;  %vm1203_vm0 = vweird.f32 %v2135_v19 }
 0x105   : > { %v1270_v14 = vadd.f32 0.014752088, %v1269_v56  ;;  %v1001_v36 = vadd.f32 %v985_v60, %v951_v49  ;;  %v785_v43 = vmul.f32 %v2461_v6, %v2716_v3  ;;  %v1751_v39 = vmul.f32 %v1735_v13, %v2644_v42  ;;  %vm1204_vm4 = vmor %vm1202_vm14, %vm1203_vm0 }
 0x106   : > { %v1200_v26 = vmul.f32 %v2135_v19, %v1199_v57  ;;  %vm1242_vm2 = vweird.f32 %v2824_v9  ;;  %v1249_v46 = vor.u32 1.1754944e-38, %v1248_v30  ;;  %v1260_v20 = vmul.f32 %v1259_v34, %v2808_v22  ;;  %v2892_v34 = vld [vmem:[#allocation2 + $0x79] sm:$0xff] }
 0x107   : > { %v2137_v15 = vpop.eup %2136  ;;  %v1271_v47 = vmul.f32 %v1270_v14, %v2808_v22  ;;  %v2863_v24 = vadd.f32 %v1035_v11, %v1001_v36  ;;  %v750_v52 = vadd.f32 %v734_v32, %v2744_v44  ;;  %v835_v51 = vmul.f32 %v2483_v27, %v2742_v38 }
 0x108   : > { %v1201_v58 = vadd.f32 %v2135_v19, %v1200_v26  ;;  %v1238_v42 = vmul.f32 %v2137_v15, %v2824_v9  ;;  %vm2870_vm3 = vcmp.eq.f32.partialorder %v1246_v48, 8.507059e+37  ;;  %v1261_v8 = vadd.f32 0.05243302, %v1260_v20 }
 0x109   : > { %2053 = vmatmul.msk.f32.gmra.mxu1 %vm564_vm8, %v1751_v39  ;;  %v885_v7 = vmul.f32 %v2488_v28, %v2760_v1  ;;  %v1272_v44 = vadd.f32 0.112945676, %v1271_v47  ;;  %v2882_v21 = vmul.f32 0.70710677, %v2863_v24  ;;  %v801_v2 = vadd.f32 %v785_v43, %v750_v52 }
 0x10a   : > { %v936_v13 = vmul.f32 %v2495_v35, %v2876_v33  ;;  %v1205_v12 = vsel %vm1204_vm4, %v2135_v19, %v1201_v58  ;;  %v1239_v30 = vsub.f32 1.0, %v1238_v42  ;;  %vm1243_vm5 = vweird.f32 %v2137_v15 }
 0x10b   : > { %v1262_v31 = vmul.f32 %v1261_v8, %v2808_v22  ;;  %v1210_v56 = vsel %vm2843_vm15, %v1209_v23, %v1205_v12  ;;  %v1273_v49 = vmul.f32 %v1272_v44, %v2808_v22  ;;  %v1294_v29 = vmul.f32 %v2882_v21, %v2882_v21  ;;  %vm1244_vm6 = vmor %vm1242_vm2, %vm1243_vm5 }
 0x10c   : > { %v851_v60 = vadd.f32 %v835_v51, %v801_v2  ;;  %v1211_v11 = vmul.f32 %v1210_v56, %v1186_v17  ;;  %v1240_v57 = vmul.f32 %v2137_v15, %v1239_v30  ;;  %v633_v19 = vmul.f32 %v2424_v50, %v2816_v45  ;;  %v2908_v51 = vld [vmem:[#allocation2 + $0x7a] sm:$0xff] }
 0x10d   : > { %v1263_v48 = vadd.f32 0.18741608, %v1262_v31  ;;  %v1274_v32 = vadd.f32 0.4994258, %v1273_v49  ;;  %v2896_v14 = vmin.f32 %v1294_v29, 16.0  ;;  %v986_v23 = vmul.f32 %v2523_v59, %v2892_v34 }
 0x10e   : > { %v901_v36 = vadd.f32 %v885_v7, %v851_v60  ;;  %v2038_v41 = vclamps-f32 %v1211_v11, 1.0  ;;  %v1241_v43 = vadd.f32 %v2137_v15, %v1240_v57  ;;  %v653_v17 = vadd.f32 %v2439_v61, %v633_v19 }
 0x10f   : > { %v1264_v39 = vmul.f32 %v1263_v48, %v2808_v22  ;;  %v1275_v26 = vmul.f32 %v1274_v32, %v2808_v22  ;;  %v1296_v20 = vmul.f32 2.1237322e-06, %v2896_v14  ;;  %v1307_v47 = vmul.f32 3.8918573e-05, %v2896_v14  ;;  %v2934_v32 = vld [vmem:[#allocation2 + $0x80] sm:$0xff] }
 0x110   : > { %v952_v52 = vadd.f32 %v936_v13, %v901_v36  ;;  %v1736_v58 = vadd.f32 1.0, %v2038_v41  ;;  %v1245_v42 = vsel %vm1244_vm6, %v2137_v15, %v1241_v43  ;;  %v1036_v8 = vmul.f32 %v2542_v10, %v2908_v51  ;;  %v2941_v43 = vld [vmem:[#allocation2 + $0x81] sm:$0xff] }
 0x111   : > { %v687_v7 = vmul.f32 %v2446_v63, %v2833_v16  ;;  %v1250_v9 = vsel %vm2870_vm3, %v1249_v46, %v1245_v42  ;;  %v2916_v44 = vadd.f32 1.0, %v1275_v26  ;;  %v1297_v22 = vadd.f32 0.00028619796, %v1296_v20 }
 0x112   : > { %v1308_v2 = vadd.f32 0.001143296, %v1307_v47  ;;  %v1752_v12 = vmul.f32 %v1736_v58, %v2830_v5  ;;  %v1251_v13 = vmul.f32 %v1250_v9, %v2839_v25  ;;  %v1265_v30 = vadd.f32 1.1283791, %v1264_v39  ;;  %v2943_v39 = vld [vmem:[#allocation2 + $0x82] sm:$0xff]  ;;  %v2952_v47 = vld [vmem:[#allocation2 + $0x98] sm:$0xff] }
 0x113   : > { %v1002_v31 = vadd.f32 %v986_v23, %v952_v52  ;;  %2138 = vrcp.f32 %v2916_v44  ;;  %v1288_v15 = vand.u32 2147483648, %v2916_v44  ;;  %v703_v56 = vadd.f32 %v687_v7, %v653_v17  ;;  %v2958_v7 = vld [vmem:[#allocation2 + $0x99] sm:$0xff] }
 0x114   : > { %2054 = vmatmul.msk.f32.gmra.mxu1 %vm564_vm8, %v1752_v12  ;;  %v2039_v49 = vclamps-f32 %v1251_v13, 1.0  ;;  %v1298_v46 = vmul.f32 %v1297_v22, %v2896_v14  ;;  %v1309_v37 = vmul.f32 %v1308_v2, %v2896_v14  ;;  %v1065_v5 = vmul.f32 0.5, %v2703_v53 }
 0x115   : > { %v2925_v29 = vadd.f32 %v1036_v8, %v1002_v31  ;;  %v1286_v25 = vand.u32 2147483647, %v2916_v44  ;;  %v737_v60 = vmul.f32 %v2451_v0, %v2835_v18  ;;  %v2932_v57 = vmul.f32 %v1265_v30, %v2790_v62 }
 0x116   : > { %v1737_v11 = vadd.f32 1.0, %v2039_v49  ;;  %v1299_v48 = vadd.f32 0.0036580483, %v1298_v46  ;;  %v1310_v19 = vadd.f32 0.014752088, %v1309_v37  ;;  %v1289_v36 = vor.u32 1.1754944e-38, %v1288_v15 }
 0x117   : > { %v2937_v23 = vmul.f32 0.70710677, %v2925_v29  ;;  %v753_v41 = vadd.f32 %v737_v60, %v703_v56  ;;  %v788_v53 = vmul.f32 %v2461_v6, %v2934_v32  ;;  %vm1282_vm7 = vweird.f32 %v2916_v44 }
 0x118   : > { %v1300_v62 = vmul.f32 %v1299_v48, %v2896_v14  ;;  %v1311_v17 = vmul.f32 %v1310_v19, %v2896_v14  ;;  %v838_v26 = vmul.f32 %v2483_v27, %v2941_v43  ;;  %v888_v20 = vmul.f32 %v2488_v28, %v2943_v39 }
 0x119   : > { %v2139_v52 = vpop.eup %2138  ;;  %v1753_v6 = vmul.f32 %v1737_v11, %v1065_v5  ;;  %v1334_v58 = vmul.f32 %v2937_v23, %v2937_v23  ;;  %v804_v42 = vadd.f32 %v788_v53, %v753_v41  ;;  %v939_v8 = vmul.f32 %v2495_v35, %v2952_v47 }
 0x11a   : > { %v1278_v9 = vmul.f32 %v2139_v52, %v2916_v44  ;;  %vm2961_vm9 = vcmp.eq.f32.partialorder %v1286_v25, 8.507059e+37  ;;  %v1301_v2 = vadd.f32 0.05243302, %v1300_v62  ;;  %v1312_v12 = vadd.f32 0.112945676, %v1311_v17  ;;  %v2981_v17 = vld [vmem:[#allocation2 + $0x9a] sm:$0xff] }
 0x11b   : > { %v989_v13 = vmul.f32 %v2523_v59, %v2958_v7  ;;  %vm1283_vm10 = vweird.f32 %v2139_v52  ;;  %v2967_v30 = vmin.f32 %v1334_v58, 16.0  ;;  %v854_v31 = vadd.f32 %v838_v26, %v804_v42 }
 0x11c   : > { %v631_v15 = vmul.f32 %v2424_v50, %v2659_v54  ;;  %2055 = vmatmul.msk.f32.gmra.mxu1 %vm564_vm8, %v1753_v6  ;;  %v1279_v56 = vsub.f32 1.0, %v1278_v9  ;;  %v1302_v49 = vmul.f32 %v1301_v2, %v2896_v14  ;;  %v1313_v46 = vmul.f32 %v1312_v12, %v2896_v14  ;;  %vm1284_vm11 = vmor %vm1282_vm7, %vm1283_vm10 }
 0x11d   : > { %v685_v37 = vmul.f32 %v2446_v63, %v2661_v55  ;;  %v1336_v5 = vmul.f32 2.1237322e-06, %v2967_v30  ;;  %v1347_v25 = vmul.f32 3.8918573e-05, %v2967_v30  ;;  %v904_v60 = vadd.f32 %v888_v20, %v854_v31 }
 0x11e   : > { %v651_v11 = vadd.f32 %v2439_v61, %v631_v15  ;;  %v1280_v48 = vmul.f32 %v2139_v52, %v1279_v56  ;;  %v1303_v19 = vadd.f32 0.18741608, %v1302_v49  ;;  %v1314_v50 = vadd.f32 0.4994258, %v1313_v46 }
 0x11f   : > { %v735_v54 = vmul.f32 %v2451_v0, %v2671_v4  ;;  %v1337_v41 = vadd.f32 0.00028619796, %v1336_v5  ;;  %v1348_v53 = vadd.f32 0.001143296, %v1347_v25  ;;  %v955_v62 = vadd.f32 %v939_v8, %v904_v60 }
 0x120   : > { %v701_v26 = vadd.f32 %v685_v37, %v651_v11  ;;  %v1281_v63 = vadd.f32 %v2139_v52, %v1280_v48  ;;  %v1304_v55 = vmul.f32 %v1303_v19, %v2896_v14  ;;  %v1315_v6 = vmul.f32 %v1314_v50, %v2896_v14  ;;  %v2997_v14 = vld [vmem:[%s3596_s3 + $0x3] ss:$0 sm:$0xff] }
 0x121   : > { %v1039_v61 = vmul.f32 %v2542_v10, %v2981_v17  ;;  %v1338_v0 = vmul.f32 %v1337_v41, %v2967_v30  ;;  %v1349_v4 = vmul.f32 %v1348_v53, %v2967_v30  ;;  %v1005_v20 = vadd.f32 %v989_v13, %v955_v62 }
 0x122   : > { %v751_v58 = vadd.f32 %v735_v54, %v701_v26  ;;  %v1285_v42 = vsel %vm1284_vm11, %v2139_v52, %v1281_v63  ;;  %v1305_v8 = vadd.f32 1.1283791, %v1304_v55  ;;  %v2992_v9 = vadd.f32 1.0, %v1315_v6 }
 0x123   : > { %v786_v2 = vmul.f32 %v2997_v14, %v2816_v45  ;;  %v1290_v44 = vsel %vm2961_vm9, %v1289_v36, %v1285_v42  ;;  %v1339_v12 = vadd.f32 0.0036580483, %v1338_v0  ;;  %v1350_v31 = vadd.f32 0.014752088, %v1349_v4  ;;  %v3049_v0 = vld [vmem:[%s3597_s4] ss:$0 sm:$0xff] }
 0x124   : > { %v3003_v15 = vadd.f32 %v1039_v61, %v1005_v20  ;;  %v1291_v52 = vmul.f32 %v1290_v44, %v2932_v57  ;;  %2140 = vrcp.f32 %v2992_v9  ;;  %v1066_v13 = vmul.f32 0.5, %v2776_v40  ;;  %v3058_v42 = vld [vmem:[%s3596_s3 + $0x1] ss:$0 sm:$0xff] }
 0x125   : > { %v3009_v56 = vmul.f32 0.5, %v2863_v24  ;;  %v1340_v49 = vmul.f32 %v1339_v12, %v2967_v30  ;;  %v1351_v45 = vmul.f32 %v1350_v31, %v2967_v30  ;;  %v802_v22 = vadd.f32 %v786_v2, %v751_v58  ;;  %v3062_v31 = vld [vmem:[#allocation2 + $0x90] sm:$0xff] }
 0x126   : > { %v2040_v46 = vclamps-f32 %v1291_v52, 1.0  ;;  %v3014_v36 = vmul.f32 0.70710677, %v3003_v15  ;;  %v836_v37 = vmul.f32 %v2483_v27, %v2833_v16  ;;  %v3019_v57 = vmul.f32 %v1305_v8, %v2882_v21 }
 0x127   : > { %v1341_v5 = vadd.f32 0.05243302, %v1340_v49  ;;  %v1352_v40 = vadd.f32 0.112945676, %v1351_v45  ;;  %v886_v24 = vmul.f32 %v2488_v28, %v2835_v18  ;;  %v1326_v60 = vand.u32 2147483647, %v2992_v9 }
 0x128   : > { %v1738_v25 = vadd.f32 1.0, %v2040_v46  ;;  %v1454_v11 = vmul.f32 %v3014_v36, %v3014_v36  ;;  %v852_v48 = vadd.f32 %v836_v37, %v802_v22  ;;  %v1328_v19 = vand.u32 2147483648, %v2992_v9  ;;  %v3036_v18 = vld [vmem:[%s3596_s3] ss:$0 sm:$0xff] }
 0x129   : > { %v1342_v50 = vmul.f32 %v1341_v5, %v2967_v30  ;;  %v1353_v27 = vmul.f32 %v1352_v40, %v2967_v30  ;;  %v937_v16 = vmul.f32 %v2495_v35, %v2934_v32  ;;  %v634_v53 = vmul.f32 %v3036_v18, %v2876_v33 }
 0x12a   : > { %v2141_v21 = vpop.eup %2140  ;;  %v1754_v54 = vmul.f32 %v1738_v25, %v1066_v13  ;;  %v3031_v41 = vmin.f32 %v1454_v11, 16.0  ;;  %v902_v28 = vadd.f32 %v886_v24, %v852_v48  ;;  %v987_v35 = vmul.f32 %v2523_v59, %v2941_v43 }
 0x12b   : > { %v1318_v62 = vmul.f32 %v2141_v21, %v2992_v9  ;;  %v1343_v26 = vadd.f32 0.18741608, %v1342_v50  ;;  %v1354_v63 = vadd.f32 0.4994258, %v1353_v27  ;;  %v654_v4 = vadd.f32 %v3049_v0, %v634_v53 }
 0x12c   : > { %2056 = vmatmul.msk.f32.gmra.mxu1 %vm564_vm8, %v1754_v54  ;;  %v1456_v55 = vmul.f32 2.1237322e-06, %v3031_v41  ;;  %v1467_v6 = vmul.f32 3.8918573e-05, %v3031_v41  ;;  %v953_v61 = vadd.f32 %v937_v16, %v902_v28  ;;  %v1037_v59 = vmul.f32 %v2542_v10, %v2943_v39  ;;  %v3069_v10 = vld [vmem:[%s3596_s3 + $0x2] ss:$0 sm:$0xff] }
 0x12d   : > { %v1319_v20 = vsub.f32 1.0, %v1318_v62  ;;  %v1355_v58 = vmul.f32 %v1354_v63, %v2967_v30  ;;  %v688_v8 = vmul.f32 %v3058_v42, %v2892_v34  ;;  %vm1323_vm12 = vweird.f32 %v2141_v21  ;;  %v3087_v54 = vld [vmem:[#allocation2 + $0x91] sm:$0xff] }
 0x12e   : > { %v1457_v2 = vadd.f32 0.00028619796, %v1456_v55  ;;  %v1468_v44 = vadd.f32 0.001143296, %v1467_v6  ;;  %v1003_v12 = vadd.f32 %v987_v35, %v953_v61  ;;  %v738_v45 = vmul.f32 %v3069_v10, %v2908_v51  ;;  %v3099_v55 = vld [vmem:[#allocation2 + $0xa9] sm:$0xff] }
 0x12f   : > { %v1320_v52 = vmul.f32 %v2141_v21, %v1319_v20  ;;  %v3064_v13 = vadd.f32 1.0, %v1355_v58  ;;  %v704_v49 = vadd.f32 %v688_v8, %v654_v4  ;;  %v1344_v46 = vmul.f32 %v1343_v26, %v2967_v30  ;;  %v3105_v4 = vld [vmem:[%s3596_s3 + $0x4] ss:$0 sm:$0xff]  ;;  %v3112_v20 = vld [vmem:[%s3596_s3 + $0x5] ss:$0 sm:$0xff] }
 0x130   : > { %v1458_v22 = vmul.f32 %v1457_v2, %v3031_v41  ;;  %v1469_v37 = vmul.f32 %v1468_v44, %v3031_v41  ;;  %v3076_v5 = vadd.f32 %v1037_v59, %v1003_v12  ;;  %vm1322_vm13 = vweird.f32 %v2992_v9  ;;  %v3089_v9 = vld [vmem:[#allocation2 + $0x92] sm:$0xff]  ;;  %v3121_v12 = vld [vmem:[%s3596_s3 + $0x6] ss:$0 sm:$0xff] }
 0x131   : > { %v1321_v40 = vadd.f32 %v2141_v21, %v1320_v52  ;;  %2142 = vrcp.f32 %v3064_v13  ;;  %v789_v24 = vmul.f32 %v2997_v14, %v3062_v31  ;;  %vm1324_vm14 = vmor %vm1322_vm13, %vm1323_vm12  ;;  %vm1327_vm15 = vcmp.eq.f32.partialorder %v1326_v60, 8.507059e+37 }
 0x132   : > { %v1329_v25 = vor.u32 1.1754944e-38, %v1328_v19  ;;  %v1368_v30 = vand.u32 2147483648, %v3064_v13  ;;  %v1459_v11 = vadd.f32 0.0036580483, %v1458_v22  ;;  %v1470_v50 = vadd.f32 0.014752088, %v1469_v37 }
 0x133   : > { %v1325_v48 = vsel %vm1324_vm14, %v2141_v21, %v1321_v40  ;;  %v3085_v27 = vmul.f32 0.70710677, %v3076_v5  ;;  %v754_v16 = vadd.f32 %v738_v45, %v704_v49  ;;  %v1345_v53 = vadd.f32 1.1283791, %v1344_v46  ;;  %v3093_v19 = vld [vmem:[#allocation2 + $0xa8] sm:$0xff] }
 0x134   : > { %v1330_v28 = vsel %vm1327_vm15, %v1329_v25, %v1325_v48  ;;  %v1366_v62 = vand.u32 2147483647, %v3064_v13  ;;  %v1460_v60 = vmul.f32 %v1459_v11, %v3031_v41  ;;  %v1471_v21 = vmul.f32 %v1470_v50, %v3031_v41  ;;  %v3130_v22 = vld [vmem:[%s3596_s3 + $0x7] ss:$0 sm:$0xff]  ;;  %v3137_v11 = vld [vmem:[#allocation2 + $0xaa] sm:$0xff] }
 0x135   : > { %v1331_v26 = vmul.f32 %v1330_v28, %v3019_v57  ;;  %v1374_v63 = vmul.f32 %v3085_v27, %v3085_v27  ;;  %v805_v35 = vadd.f32 %v789_v24, %v754_v16  ;;  %vm1362_vm0 = vweird.f32 %v3064_v13 }
 0x136   : > { %v1369_v6 = vor.u32 1.1754944e-38, %v1368_v30  ;;  %v1461_v61 = vadd.f32 0.05243302, %v1460_v60  ;;  %v839_v57 = vmul.f32 %v3105_v4, %v3087_v54  ;;  %v889_v58 = vmul.f32 %v3112_v20, %v3089_v9 }
 0x137   : > { %v2143_v59 = vpop.eup %2142  ;;  %v2041_v8 = vclamps-f32 %v1331_v26, 1.0  ;;  %v1472_v2 = vadd.f32 0.112945676, %v1471_v21  ;;  %v3116_v44 = vmin.f32 %v1374_v63, 16.0  ;;  %v940_v52 = vmul.f32 %v3121_v12, %v3093_v19 }
 0x138   : > { %v1358_v49 = vmul.f32 %v2143_v59, %v3064_v13  ;;  %v1462_v45 = vmul.f32 %v1461_v61, %v3031_v41  ;;  %v855_v46 = vadd.f32 %v839_v57, %v805_v35  ;;  %v990_v37 = vmul.f32 %v3130_v22, %v3099_v55  ;;  %v3143_v61 = vld [vmem:[%s3596_s3 + $0x8] ss:$0 sm:$0xff] }
 0x139   : > { %v1739_v40 = vadd.f32 1.0, %v2041_v8  ;;  %v1473_v24 = vmul.f32 %v1472_v2, %v3031_v41  ;;  %v1376_v25 = vmul.f32 2.1237322e-06, %v3116_v44  ;;  %v1387_v30 = vmul.f32 3.8918573e-05, %v3116_v44 }
 0x13a   : > { %v1359_v48 = vsub.f32 1.0, %v1358_v49  ;;  %vm1363_vm2 = vweird.f32 %v2143_v59  ;;  %v1463_v50 = vadd.f32 0.18741608, %v1462_v45  ;;  %v905_v16 = vadd.f32 %v889_v58, %v855_v46 }
 0x13b   : > { %v1755_v28 = vmul.f32 %v1739_v40, %v3009_v56  ;;  %v1474_v60 = vadd.f32 0.4994258, %v1473_v24  ;;  %v1377_v26 = vadd.f32 0.00028619796, %v1376_v25  ;;  %v1388_v21 = vadd.f32 0.001143296, %v1387_v30  ;;  %vm1364_vm3 = vmor %vm1362_vm0, %vm1363_vm2 }
 0x13c   : > { %v1360_v63 = vmul.f32 %v2143_v59, %v1359_v48  ;;  %v956_v35 = vadd.f32 %v940_v52, %v905_v16  ;;  %v1040_v57 = vmul.f32 %v3143_v61, %v3137_v11  ;;  %v632_v8 = vmul.f32 %v3036_v18, %v2716_v3 }
 0x13d   : > { %2057 = vmatmul.msk.f32.gmra.mxu1 %vm564_vm8, %v1755_v28  ;;  %v1464_v56 = vmul.f32 %v1463_v50, %v3031_v41  ;;  %v1475_v58 = vmul.f32 %v1474_v60, %v3031_v41  ;;  %v1378_v2 = vmul.f32 %v1377_v26, %v3116_v44  ;;  %v1389_v52 = vmul.f32 %v1388_v21, %v3116_v44 }
 0x13e   : > { %v1361_v49 = vadd.f32 %v2143_v59, %v1360_v63  ;;  %v1006_v45 = vadd.f32 %v990_v37, %v956_v35  ;;  %v652_v46 = vadd.f32 %v3049_v0, %v632_v8  ;;  %v686_v40 = vmul.f32 %v3058_v42, %v2742_v38 }
 0x13f   : > { %v3160_v3 = vadd.f32 1.0, %v1475_v58  ;;  %v1379_v24 = vadd.f32 0.0036580483, %v1378_v2  ;;  %v1390_v25 = vadd.f32 0.014752088, %v1389_v52  ;;  %v736_v41 = vmul.f32 %v3069_v10, %v2760_v1 }
 0x140   : > { %v1346_v30 = vmul.f32 %v1345_v53, %v2937_v23  ;;  %v1365_v48 = vsel %vm1364_vm3, %v2143_v59, %v1361_v49  ;;  %vm1367_vm4 = vcmp.eq.f32.partialorder %v1366_v62, 8.507059e+37  ;;  %v3165_v37 = vadd.f32 %v1040_v57, %v1006_v45 }
 0x141   : > { %v1370_v50 = vsel %vm1367_vm4, %v1369_v6, %v1365_v48  ;;  %v1465_v16 = vadd.f32 1.1283791, %v1464_v56  ;;  %2144 = vrcp.f32 %v3160_v3  ;;  %v702_v38 = vadd.f32 %v686_v40, %v652_v46 }
 0x142   : > { %v1371_v13 = vmul.f32 %v1370_v50, %v1346_v30  ;;  %v1380_v28 = vmul.f32 %v1379_v24, %v3116_v44  ;;  %v1391_v60 = vmul.f32 %v1390_v25, %v3116_v44  ;;  %v1486_v26 = vand.u32 2147483647, %v3160_v3 }
 0x143   : > { %v3172_v1 = vmul.f32 0.70710677, %v3165_v37  ;;  %v752_v23 = vadd.f32 %v736_v41, %v702_v38  ;;  %v1068_v6 = vmul.f32 0.5, %v2925_v29  ;;  %v1466_v21 = vmul.f32 %v1465_v16, %v3014_v36 }
 0x144   : > { %v2042_v53 = vclamps-f32 %v1371_v13, 1.0  ;;  %v1381_v62 = vadd.f32 0.05243302, %v1380_v28  ;;  %v1392_v59 = vadd.f32 0.112945676, %v1391_v60  ;;  %v787_v35 = vmul.f32 %v2997_v14, %v2876_v33 }
 0x145   : > { %v1494_v63 = vmul.f32 %v3172_v1, %v3172_v1  ;;  %vm1482_vm5 = vweird.f32 %v3160_v3  ;;  %v1488_v8 = vand.u32 2147483648, %v3160_v3  ;;  %v837_v36 = vmul.f32 %v3105_v4, %v2892_v34 }
 0x146   : > { %v1740_v57 = vadd.f32 1.0, %v2042_v53  ;;  %v1382_v56 = vmul.f32 %v1381_v62, %v3116_v44  ;;  %v1393_v58 = vmul.f32 %v1392_v59, %v3116_v44  ;;  %v803_v29 = vadd.f32 %v787_v35, %v752_v23 }
 0x147   : > { %v2145_v2 = vpop.eup %2144  ;;  %v3184_v52 = vmin.f32 %v1494_v63, 16.0  ;;  %v887_v49 = vmul.f32 %v3112_v20, %v2908_v51  ;;  %vm3191_vm6 = vcmp.eq.f32.partialorder %v1486_v26, 8.507059e+37  ;;  %v938_v24 = vmul.f32 %v3121_v12, %v3062_v31 }
 0x148   : > { %v1756_v33 = vmul.f32 %v1740_v57, %v1068_v6  ;;  %v1478_v45 = vmul.f32 %v2145_v2, %v3160_v3  ;;  %v1383_v40 = vadd.f32 0.18741608, %v1382_v56  ;;  %v1394_v25 = vadd.f32 0.4994258, %v1393_v58 }
 0x149   : > { %v1496_v41 = vmul.f32 2.1237322e-06, %v3184_v52  ;;  %v1507_v30 = vmul.f32 3.8918573e-05, %v3184_v52  ;;  %v853_v34 = vadd.f32 %v837_v36, %v803_v29  ;;  %vm1483_vm7 = vweird.f32 %v2145_v2 }
 0x14a   : > { %2058 = vmatmul.msk.f32.gmra.mxu1 %vm564_vm8, %v1756_v33  ;;  %v1479_v51 = vsub.f32 1.0, %v1478_v45  ;;  %v635_v48 = vmul.f32 %v3036_v18, %v2934_v32  ;;  %v689_v50 = vmul.f32 %v3058_v42, %v2941_v43  ;;  %v1395_v16 = vmul.f32 %v1394_v25, %v3116_v44  ;;  %vm1484_vm9 = vmor %vm1482_vm5, %vm1483_vm7 }
 0x14b   : > { %v1497_v38 = vadd.f32 0.00028619796, %v1496_v41  ;;  %v1508_v13 = vadd.f32 0.001143296, %v1507_v30  ;;  %v903_v28 = vadd.f32 %v887_v49, %v853_v34  ;;  %v1384_v26 = vmul.f32 %v1383_v40, %v3116_v44  ;;  %v3231_v30 = vld [vmem:[#allocation2 + $0xb0] sm:$0xff] }
 0x14c   : > { %v1480_v60 = vmul.f32 %v2145_v2, %v1479_v51  ;;  %v655_v23 = vadd.f32 %v3049_v0, %v635_v48  ;;  %v739_v53 = vmul.f32 %v3069_v10, %v2943_v39  ;;  %v3209_v62 = vadd.f32 1.0, %v1395_v16 }
 0x14d   : > { %v1498_v32 = vmul.f32 %v1497_v38, %v3184_v52  ;;  %v1509_v59 = vmul.f32 %v1508_v13, %v3184_v52  ;;  %v954_v43 = vadd.f32 %v938_v24, %v903_v28  ;;  %v1489_v63 = vor.u32 1.1754944e-38, %v1488_v8 }
 0x14e   : > { %v1481_v6 = vadd.f32 %v2145_v2, %v1480_v60  ;;  %v988_v35 = vmul.f32 %v3130_v22, %v3087_v54  ;;  %v705_v57 = vadd.f32 %v689_v50, %v655_v23  ;;  %2146 = vrcp.f32 %v3209_v62 }
 0x14f   : > { %v1408_v39 = vand.u32 2147483648, %v3209_v62  ;;  %v1038_v44 = vmul.f32 %v3143_v61, %v3089_v9  ;;  %v790_v56 = vmul.f32 %v2997_v14, %v2952_v47  ;;  %v1499_v8 = vadd.f32 0.0036580483, %v1498_v32 }
 0x150   : > { %v1485_v58 = vsel %vm1484_vm9, %v2145_v2, %v1481_v6  ;;  %v1510_v29 = vadd.f32 0.014752088, %v1509_v59  ;;  %v1004_v36 = vadd.f32 %v988_v35, %v954_v43  ;;  %v1071_v49 = vmul.f32 0.5, %v3003_v15  ;;  %v3233_v2 = vld [vmem:[#allocation2 + $0xb1] sm:$0xff] }
 0x151   : > { %v1490_v3 = vsel %vm3191_vm6, %v1489_v63, %v1485_v58  ;;  %v1385_v33 = vadd.f32 1.1283791, %v1384_v26  ;;  %v755_v45 = vadd.f32 %v739_v53, %v705_v57  ;;  %v1500_v24 = vmul.f32 %v1499_v8, %v3184_v52 }
 0x152   : > { %v1491_v40 = vmul.f32 %v1490_v3, %v1466_v21  ;;  %v1511_v25 = vmul.f32 %v1510_v29, %v3184_v52  ;;  %v3229_v41 = vadd.f32 %v1038_v44, %v1004_v36  ;;  %v1406_v34 = vand.u32 2147483647, %v3209_v62  ;;  %v3240_v21 = vld [vmem:[#allocation2 + $0xb2] sm:$0xff] }
 0x153   : > { %v806_v51 = vadd.f32 %v790_v56, %v755_v45  ;;  %v840_v15 = vmul.f32 %v3105_v4, %v2958_v7  ;;  %v890_v46 = vmul.f32 %v3112_v20, %v2981_v17  ;;  %vm1402_vm10 = vweird.f32 %v3209_v62 }
 0x154   : > { %v2045_v48 = vclamps-f32 %v1491_v40, 1.0  ;;  %v1409_v50 = vor.u32 1.1754944e-38, %v1408_v39  ;;  %v1501_v16 = vadd.f32 0.05243302, %v1500_v24  ;;  %v1512_v38 = vadd.f32 0.112945676, %v1511_v25  ;;  %v2147_v13 = vpop.eup %2146 }
 0x155   : > { %v3244_v28 = vmul.f32 0.70710677, %v3229_v41  ;;  %v856_v60 = vadd.f32 %v840_v15, %v806_v51  ;;  %v941_v26 = vmul.f32 %v3121_v12, %v3231_v30  ;;  %v991_v23 = vmul.f32 %v3130_v22, %v3233_v2 }
 0x156   : > { %v1743_v53 = vadd.f32 1.0, %v2045_v48  ;;  %v1398_v32 = vmul.f32 %v2147_v13, %v3209_v62  ;;  %v1502_v59 = vmul.f32 %v1501_v16, %v3184_v52  ;;  %v1041_v43 = vmul.f32 %v3143_v61, %v3240_v21 }
 0x157   : > { %v1513_v6 = vmul.f32 %v1512_v38, %v3184_v52  ;;  %v1414_v63 = vmul.f32 %v3244_v28, %v3244_v28  ;;  %v906_v35 = vadd.f32 %v890_v46, %v856_v60  ;;  %v636_v57 = vmul.f32 %v3036_v18, %v3062_v31 }
 0x158   : > { %v1759_v39 = vmul.f32 %v1743_v53, %v1071_v49  ;;  %v1399_v44 = vsub.f32 1.0, %v1398_v32  ;;  %v1503_v56 = vadd.f32 0.18741608, %v1502_v59  ;;  %v690_v58 = vmul.f32 %v3058_v42, %v3087_v54 }
 0x159   : > { %v1514_v8 = vadd.f32 0.4994258, %v1513_v6  ;;  %v3261_v29 = vmin.f32 %v1414_v63, 16.0  ;;  %v957_v36 = vadd.f32 %v941_v26, %v906_v35  ;;  %v656_v3 = vadd.f32 %v3049_v0, %v636_v57  ;;  %v3299_v35 = vld [vmem:[#allocation2 + $0xc2] sm:$0xff] }
 0x15a   : > { %2061 = vmatmul.msk.f32.vlgmr.msra.gmra.mxu3 %vm564_vm8, %v1759_v39  ;;  %v1400_v45 = vmul.f32 %v2147_v13, %v1399_v44  ;;  %vm1403_vm11 = vweird.f32 %v2147_v13  ;;  %v1504_v40 = vmul.f32 %v1503_v56, %v3184_v52  ;;  %v740_v31 = vmul.f32 %v3069_v10, %v3089_v9 }
 0x15b   : > { %v1515_v49 = vmul.f32 %v1514_v8, %v3184_v52  ;;  %v1416_v24 = vmul.f32 2.1237322e-06, %v3261_v29  ;;  %v1427_v54 = vmul.f32 3.8918573e-05, %v3261_v29  ;;  %v1007_v25 = vadd.f32 %v991_v23, %v957_v36  ;;  %vm1404_vm12 = vmor %vm1402_vm10, %vm1403_vm11 }
 0x15c   : > { %v1401_v51 = vadd.f32 %v2147_v13, %v1400_v45  ;;  %v1505_v15 = vadd.f32 1.1283791, %v1504_v40  ;;  %v706_v46 = vadd.f32 %v690_v58, %v656_v3  ;;  %v791_v48 = vmul.f32 %v2997_v14, %v3093_v19 }
 0x15d   : > { %v3275_v16 = vadd.f32 1.0, %v1515_v49  ;;  %v1417_v38 = vadd.f32 0.00028619796, %v1416_v24  ;;  %v1428_v9 = vadd.f32 0.001143296, %v1427_v54  ;;  %v3277_v60 = vadd.f32 %v1041_v43, %v1007_v25 }
 0x15e   : > { %v1386_v52 = vmul.f32 %v1385_v33, %v3085_v27  ;;  %v1405_v26 = vsel %vm1404_vm12, %v2147_v13, %v1401_v51  ;;  %vm1407_vm13 = vcmp.eq.f32.partialorder %v1406_v34, 8.507059e+37  ;;  %v756_v23 = vadd.f32 %v740_v31, %v706_v46  ;;  %v3289_v27 = vld [vmem:[#allocation2 + $0xc0] sm:$0xff] }
 0x15f   : > { %v1069_v53 = vmul.f32 0.5, %v3076_v5  ;;  %v1410_v32 = vsel %vm1407_vm13, %v1409_v50, %v1405_v26  ;;  %2148 = vrcp.f32 %v3275_v16  ;;  %v841_v62 = vmul.f32 %v3105_v4, %v3099_v55  ;;  %v3291_v33 = vld [vmem:[#allocation2 + $0xc1] sm:$0xff] }
 0x160   : > { %v1411_v59 = vmul.f32 %v1410_v32, %v1386_v52  ;;  %v3285_v6 = vmul.f32 %v1505_v15, %v3172_v1  ;;  %v1418_v43 = vmul.f32 %v1417_v38, %v3261_v29  ;;  %v1429_v63 = vmul.f32 %v1428_v9, %v3261_v29 }
 0x161   : > { %v1526_v5 = vand.u32 2147483647, %v3275_v16  ;;  %v3295_v34 = vmul.f32 0.70710677, %v3277_v60  ;;  %v807_v50 = vadd.f32 %v791_v48, %v756_v23  ;;  %v891_v13 = vmul.f32 %v3112_v20, %v3137_v11 }
 0x162   : > { %v2043_v1 = vclamps-f32 %v1411_v59, 1.0  ;;  %vm1522_vm14 = vweird.f32 %v3275_v16  ;;  %v1528_v57 = vand.u32 2147483648, %v3275_v16  ;;  %v1419_v39 = vadd.f32 0.0036580483, %v1418_v43 }
 0x163   : > { %v1430_v44 = vadd.f32 0.014752088, %v1429_v63  ;;  %v1534_v56 = vmul.f32 %v3295_v34, %v3295_v34  ;;  %v857_v58 = vadd.f32 %v841_v62, %v807_v50  ;;  %v942_v8 = vmul.f32 %v3121_v12, %v3289_v27 }
 0x164   : > { %v992_v36 = vmul.f32 %v3130_v22, %v3291_v33  ;;  %v1741_v3 = vadd.f32 1.0, %v2043_v1  ;;  %v1420_v45 = vmul.f32 %v1419_v39, %v3261_v29  ;;  %v1042_v31 = vmul.f32 %v3143_v61, %v3299_v35 }
 0x165   : > { %v1431_v40 = vmul.f32 %v1430_v44, %v3261_v29  ;;  %v2149_v49 = vpop.eup %2148  ;;  %v3313_v24 = vmin.f32 %v1534_v56, 16.0  ;;  %v907_v54 = vadd.f32 %v891_v13, %v857_v58  ;;  %v637_v25 = vmul.f32 %v3036_v18, %v2952_v47 }
 0x166   : > { %v691_v51 = vmul.f32 %v3058_v42, %v2958_v7  ;;  %v1757_v15 = vmul.f32 %v1741_v3, %v1069_v53  ;;  %v1518_v46 = vmul.f32 %v2149_v49, %v3275_v16  ;;  %vm1523_vm15 = vweird.f32 %v2149_v49 }
 0x167   : > { %v1421_v48 = vadd.f32 0.05243302, %v1420_v45  ;;  %v1432_v38 = vadd.f32 0.112945676, %v1431_v40  ;;  %v1536_v9 = vmul.f32 2.1237322e-06, %v3313_v24  ;;  %v958_v26 = vadd.f32 %v942_v8, %v907_v54  ;;  %vm1524_vm2 = vmor %vm1522_vm14, %vm1523_vm15 }
 0x168   : > { %v1547_v52 = vmul.f32 3.8918573e-05, %v3313_v24  ;;  %2059 = vmatmul.msk.f32.gmra.mxu1 %vm564_vm8, %v1757_v15  ;;  %v1519_v23 = vsub.f32 1.0, %v1518_v46  ;;  %v657_v47 = vadd.f32 %v3049_v0, %v637_v25  ;;  %v741_v7 = vmul.f32 %v3069_v10, %v2981_v17 }
 0x169   : > { %v1422_v32 = vmul.f32 %v1421_v48, %v3261_v29  ;;  %v1433_v53 = vmul.f32 %v1432_v38, %v3261_v29  ;;  %v1537_v62 = vadd.f32 0.00028619796, %v1536_v9  ;;  %v1008_v43 = vadd.f32 %v992_v36, %v958_v26  ;;  %v3351_v9 = vld [vmem:[#allocation2 + $0xc8] sm:$0xff] }
 0x16a   : > { %v1548_v59 = vadd.f32 0.001143296, %v1547_v52  ;;  %v1520_v63 = vmul.f32 %v2149_v49, %v1519_v23  ;;  %v707_v13 = vadd.f32 %v691_v51, %v657_v47  ;;  %v792_v1 = vmul.f32 %v2997_v14, %v3231_v30  ;;  %v3356_v52 = vld [vmem:[#allocation2 + $0xca] sm:$0xff] }
 0x16b   : > { %v1423_v50 = vadd.f32 0.18741608, %v1422_v32  ;;  %v1434_v39 = vadd.f32 0.4994258, %v1433_v53  ;;  %v1538_v44 = vmul.f32 %v1537_v62, %v3313_v24  ;;  %v3332_v58 = vadd.f32 %v1042_v31, %v1008_v43 }
 0x16c   : > { %v1549_v56 = vmul.f32 %v1548_v59, %v3313_v24  ;;  %v1521_v8 = vadd.f32 %v2149_v49, %v1520_v63  ;;  %vm1527_vm0 = vcmp.eq.f32.partialorder %v1526_v5, 8.507059e+37  ;;  %v1529_v17 = vor.u32 1.1754944e-38, %v1528_v57 }
 0x16d   : > { %v757_v3 = vadd.f32 %v741_v7, %v707_v13  ;;  %v1435_v36 = vmul.f32 %v1434_v39, %v3261_v29  ;;  %v1539_v45 = vadd.f32 0.0036580483, %v1538_v44  ;;  %v842_v54 = vmul.f32 %v3105_v4, %v3233_v2 }
 0x16e   : > { %v1550_v40 = vadd.f32 0.014752088, %v1549_v56  ;;  %v1525_v25 = vsel %vm1524_vm2, %v2149_v49, %v1521_v8  ;;  %v1424_v51 = vmul.f32 %v1423_v50, %v3261_v29  ;;  %v3342_v31 = vmul.f32 0.70710677, %v3332_v58  ;;  %v3354_v49 = vld [vmem:[#allocation2 + $0xc9] sm:$0xff] }
 0x16f   : > { %v808_v5 = vadd.f32 %v792_v1, %v757_v3  ;;  %v1530_v57 = vsel %vm1527_vm0, %v1529_v17, %v1525_v25  ;;  %v3344_v15 = vadd.f32 1.0, %v1435_v36  ;;  %v1540_v16 = vmul.f32 %v1539_v45, %v3313_v24 }
 0x170   : > { %v1551_v46 = vmul.f32 %v1550_v40, %v3313_v24  ;;  %v1531_v48 = vmul.f32 %v1530_v57, %v3285_v6  ;;  %v1574_v38 = vmul.f32 %v3342_v31, %v3342_v31  ;;  %v1072_v7 = vmul.f32 0.5, %v3165_v37 }
 0x171   : > { %2150 = vrcp.f32 %v3344_v15  ;;  %v858_v29 = vadd.f32 %v842_v54, %v808_v5  ;;  %v1541_v23 = vadd.f32 0.05243302, %v1540_v16  ;;  %v1425_v6 = vadd.f32 1.1283791, %v1424_v51 }
 0x172   : > { %v2046_v26 = vclamps-f32 %v1531_v48, 1.0  ;;  %v1552_v32 = vadd.f32 0.112945676, %v1551_v46  ;;  %v3358_v47 = vmin.f32 %v1574_v38, 16.0  ;;  %v892_v53 = vmul.f32 %v3112_v20, %v3240_v21 }
 0x173   : > { %v943_v62 = vmul.f32 %v3121_v12, %v3351_v9  ;;  %v1542_v43 = vmul.f32 %v1541_v23, %v3313_v24  ;;  %v993_v37 = vmul.f32 %v3130_v22, %v3354_v49  ;;  %v1043_v39 = vmul.f32 %v3143_v61, %v3356_v52 }
 0x174   : > { %v1744_v59 = vadd.f32 1.0, %v2046_v26  ;;  %v1553_v63 = vmul.f32 %v1552_v32, %v3313_v24  ;;  %v1576_v50 = vmul.f32 2.1237322e-06, %v3358_v47  ;;  %v1587_v13 = vmul.f32 3.8918573e-05, %v3358_v47 }
 0x175   : > { %v908_v1 = vadd.f32 %v892_v53, %v858_v29  ;;  %v1543_v56 = vadd.f32 0.18741608, %v1542_v43  ;;  %v638_v40 = vmul.f32 %v3036_v18, %v3093_v19  ;;  %v692_v54 = vmul.f32 %v3058_v42, %v3099_v55 }
 0x176   : > { %v1760_v44 = vmul.f32 %v1744_v59, %v1072_v7  ;;  %v1554_v8 = vadd.f32 0.4994258, %v1553_v63  ;;  %v1577_v17 = vadd.f32 0.00028619796, %v1576_v50  ;;  %v1588_v36 = vadd.f32 0.001143296, %v1587_v13 }
 0x177   : > { %v2151_v3 = vpop.eup %2150  ;;  %v959_v45 = vadd.f32 %v943_v62, %v908_v1  ;;  %v1446_v51 = vand.u32 2147483647, %v3344_v15  ;;  %v1448_v5 = vand.u32 2147483648, %v3344_v15  ;;  %v658_v19 = vadd.f32 %v3049_v0, %v638_v40 }
 0x178   : > { %2062 = vmatmul.msk.f32.gmra.mxu3 %vm564_vm8, %v1760_v44  ;;  %v1438_v25 = vmul.f32 %v2151_v3, %v3344_v15  ;;  %v1555_v57 = vmul.f32 %v1554_v8, %v3313_v24  ;;  %v1578_v16 = vmul.f32 %v1577_v17, %v3358_v47  ;;  %v1589_v46 = vmul.f32 %v1588_v36, %v3358_v47  ;;  %v926_v36 = vld [vmem:[#allocation2 + $0xd8] sm:$0xff] }
 0x179   : > { %v1009_v48 = vadd.f32 %v993_v37, %v959_v45  ;;  %v1544_v55 = vmul.f32 %v1543_v56, %v3313_v24  ;;  %v742_v26 = vmul.f32 %v3069_v10, %v3137_v11  ;;  %v708_v53 = vadd.f32 %v692_v54, %v658_v19 }
 0x17a   : > { %v1439_v38 = vsub.f32 1.0, %v1438_v25  ;;  %v3386_v29 = vadd.f32 1.0, %v1555_v57  ;;  %v1579_v23 = vadd.f32 0.0036580483, %v1578_v16  ;;  %v1590_v32 = vadd.f32 0.014752088, %v1589_v46 }
 0x17b   : > { %v3390_v7 = vadd.f32 %v1043_v39, %v1009_v48  ;;  %v1070_v62 = vmul.f32 0.5, %v3229_v41  ;;  %vm1443_vm3 = vweird.f32 %v2151_v3  ;;  %vm1442_vm4 = vweird.f32 %v3344_v15 }
 0x17c   : > { %v1440_v59 = vmul.f32 %v2151_v3, %v1439_v38  ;;  %2152 = vrcp.f32 %v3386_v29  ;;  %vm3395_vm5 = vcmp.eq.f32.partialorder %v1446_v51, 8.507059e+37  ;;  %v1580_v43 = vmul.f32 %v1579_v23, %v3358_v47  ;;  %vm1444_vm6 = vmor %vm1442_vm4, %vm1443_vm3  ;;  %v976_v51 = vld [vmem:[#allocation2 + $0xd9] sm:$0xff] }
 0x17d   : > { %v1591_v11 = vmul.f32 %v1590_v32, %v3358_v47  ;;  %v1449_v50 = vor.u32 1.1754944e-38, %v1448_v5  ;;  %v3402_v13 = vmul.f32 0.70710677, %v3390_v7  ;;  %v758_v41 = vadd.f32 %v742_v26, %v708_v53 }
 0x17e   : > { %v1441_v63 = vadd.f32 %v2151_v3, %v1440_v59  ;;  %v1426_v1 = vmul.f32 %v1425_v6, %v3244_v28  ;;  %v1545_v37 = vadd.f32 1.1283791, %v1544_v55  ;;  %v1581_v39 = vadd.f32 0.05243302, %v1580_v43  ;;  %v1026_v43 = vld [vmem:[#allocation2 + $0xda] sm:$0xff] }
 0x17f   : > { %v1592_v15 = vadd.f32 0.112945676, %v1591_v11  ;;  %v1614_v56 = vmul.f32 %v3402_v13, %v3402_v13  ;;  %v793_v8 = vmul.f32 %v2997_v14, %v3289_v27  ;;  %v843_v17 = vmul.f32 %v3105_v4, %v3291_v33 }
 0x180   : > { %v1445_v44 = vsel %vm1444_vm6, %v2151_v3, %v1441_v63  ;;  %vm1562_vm7 = vweird.f32 %v3386_v29  ;;  %v1582_v28 = vmul.f32 %v1581_v39, %v3358_v47  ;;  %v893_v27 = vmul.f32 %v3112_v20, %v3299_v35 }
 0x181   : > { %v1450_v45 = vsel %vm3395_vm5, %v1449_v50, %v1445_v44  ;;  %v1593_v6 = vmul.f32 %v1592_v15, %v3358_v47  ;;  %v3416_v54 = vmin.f32 %v1614_v56, 16.0  ;;  %v809_v25 = vadd.f32 %v793_v8, %v758_v41 }
 0x182   : > { %v2153_v3 = vpop.eup %2152  ;;  %v1451_v40 = vmul.f32 %v1450_v45, %v1426_v1  ;;  %v1568_v5 = vand.u32 2147483648, %v3386_v29  ;;  %v944_v16 = vmul.f32 %v3121_v12, %v926_v36  ;;  %v1583_v26 = vadd.f32 0.18741608, %v1582_v28 }
 0x183   : > { %v1558_v33 = vmul.f32 %v2153_v3, %v3386_v29  ;;  %v1594_v57 = vadd.f32 0.4994258, %v1593_v6  ;;  %v1616_v48 = vmul.f32 2.1237322e-06, %v3416_v54  ;;  %v1627_v19 = vmul.f32 3.8918573e-05, %v3416_v54 }
 0x184   : > { %v2044_v46 = vclamps-f32 %v1451_v40, 1.0  ;;  %v859_v38 = vadd.f32 %v843_v17, %v809_v25  ;;  %v994_v35 = vmul.f32 %v3130_v22, %v976_v51  ;;  %vm1563_vm9 = vweird.f32 %v2153_v3 }
 0x185   : > { %v1559_v55 = vsub.f32 1.0, %v1558_v33  ;;  %v1595_v23 = vmul.f32 %v1594_v57, %v3358_v47  ;;  %v1617_v53 = vadd.f32 0.00028619796, %v1616_v48  ;;  %v1628_v59 = vadd.f32 0.001143296, %v1627_v19  ;;  %vm1564_vm10 = vmor %vm1562_vm7, %vm1563_vm9 }
 0x186   : > { %v1742_v32 = vadd.f32 1.0, %v2044_v46  ;;  %v909_v24 = vadd.f32 %v893_v27, %v859_v38  ;;  %v1566_v63 = vand.u32 2147483647, %v3386_v29  ;;  %v1546_v44 = vmul.f32 %v1545_v37, %v3295_v34 }
 0x187   : > { %v1560_v11 = vmul.f32 %v2153_v3, %v1559_v55  ;;  %v3428_v50 = vadd.f32 1.0, %v1595_v23  ;;  %v1618_v1 = vmul.f32 %v1617_v53, %v3416_v54  ;;  %v1629_v39 = vmul.f32 %v1628_v59, %v3416_v54  ;;  %v927_v59 = vld [vmem:[#allocation2 + $0xe0] sm:$0xff] }
 0x188   : > { %v1758_v41 = vmul.f32 %v1742_v32, %v1070_v62  ;;  %v960_v15 = vadd.f32 %v944_v16, %v909_v24  ;;  %v1044_v8 = vmul.f32 %v3143_v61, %v1026_v43  ;;  %v1569_v17 = vor.u32 1.1754944e-38, %v1568_v5 }
 0x189   : > { %v1561_v56 = vadd.f32 %v2153_v3, %v1560_v11  ;;  %2154 = vrcp.f32 %v3428_v50  ;;  %v1584_v62 = vmul.f32 %v1583_v26, %v3358_v47  ;;  %v1619_v36 = vadd.f32 0.0036580483, %v1618_v1  ;;  %v977_v1 = vld [vmem:[#allocation2 + $0xe1] sm:$0xff] }
 0x18a   : > { %2060 = vmatmul.msk.f32.gmra.mxu1 %vm564_vm8, %v1758_v41  ;;  %v1010_v45 = vadd.f32 %v994_v35, %v960_v15  ;;  %vm1567_vm11 = vcmp.eq.f32.partialorder %v1566_v63, 8.507059e+37  ;;  %v1630_v6 = vadd.f32 0.014752088, %v1629_v39  ;;  %v639_v34 = vmul.f32 %v3036_v18, %v3231_v30 }
 0x18b   : > { %v1565_v28 = vsel %vm1564_vm10, %v2153_v3, %v1561_v56  ;;  %v693_v40 = vmul.f32 %v3058_v42, %v3233_v2  ;;  %v1585_v47 = vadd.f32 1.1283791, %v1584_v62  ;;  %v1620_v33 = vmul.f32 %v1619_v36, %v3416_v54 }
 0x18c   : > { %v1570_v37 = vsel %vm1567_vm11, %v1569_v17, %v1565_v28  ;;  %v1631_v27 = vmul.f32 %v1630_v6, %v3416_v54  ;;  %v3444_v29 = vadd.f32 %v1044_v8, %v1010_v45  ;;  %v659_v51 = vadd.f32 %v3049_v0, %v639_v34  ;;  %v1027_v17 = vld [vmem:[#allocation2 + $0xe2] sm:$0xff] }
 0x18d   : > { %v1571_v25 = vmul.f32 %v1570_v37, %v1546_v44  ;;  %v743_v3 = vmul.f32 %v3069_v10, %v3240_v21  ;;  %v1073_v18 = vmul.f32 0.5, %v3277_v60  ;;  %vm1602_vm12 = vweird.f32 %v3428_v50 }
 0x18e   : > { %v1632_v57 = vadd.f32 0.112945676, %v1631_v27  ;;  %v3452_v42 = vmul.f32 0.70710677, %v3444_v29  ;;  %v709_v16 = vadd.f32 %v693_v40, %v659_v51  ;;  %v794_v0 = vmul.f32 %v2997_v14, %v3351_v9 }
 0x18f   : > { %v2155_v5 = vpop.eup %2154  ;;  %v2047_v30 = vclamps-f32 %v1571_v25, 1.0  ;;  %v1608_v48 = vand.u32 2147483648, %v3428_v50  ;;  %v1621_v19 = vadd.f32 0.05243302, %v1620_v33  ;;  %v844_v55 = vmul.f32 %v3105_v4, %v3354_v49 }
 0x190   : > { %v1598_v2 = vmul.f32 %v2155_v5, %v3428_v50  ;;  %v1633_v10 = vmul.f32 %v1632_v57, %v3416_v54  ;;  %v1654_v21 = vmul.f32 %v3452_v42, %v3452_v42  ;;  %v759_v38 = vadd.f32 %v743_v3, %v709_v16 }
 0x191   : > { %v1745_v46 = vadd.f32 1.0, %v2047_v30  ;;  %v1606_v23 = vand.u32 2147483647, %v3428_v50  ;;  %vm1603_vm13 = vweird.f32 %v2155_v5  ;;  %v894_v53 = vmul.f32 %v3112_v20, %v3356_v52 }
 0x192   : > { %v1599_v60 = vsub.f32 1.0, %v1598_v2  ;;  %v1634_v35 = vadd.f32 0.4994258, %v1633_v10  ;;  %v3465_v32 = vmin.f32 %v1654_v21, 16.0  ;;  %v810_v9 = vadd.f32 %v794_v0, %v759_v38  ;;  %vm1604_vm14 = vmor %vm1602_vm12, %vm1603_vm13 }
 0x193   : > { %v1761_v26 = vmul.f32 %v1745_v46, %v1073_v18  ;;  %v1609_v11 = vor.u32 1.1754944e-38, %v1608_v48  ;;  %v1622_v63 = vmul.f32 %v1621_v19, %v3416_v54  ;;  %v945_v15 = vmul.f32 %v3121_v12, %v927_v59 }
 0x194   : > { %v1600_v14 = vmul.f32 %v2155_v5, %v1599_v60  ;;  %v1635_v24 = vmul.f32 %v1634_v35, %v3416_v54  ;;  %v1656_v43 = vmul.f32 2.1237322e-06, %v3465_v32  ;;  %v1667_v4 = vmul.f32 3.8918573e-05, %v3465_v32 }
 0x195   : > { %2063 = vmatmul.msk.f32.gmra.mxu3 %vm564_vm8, %v1761_v26  ;;  %v860_v41 = vadd.f32 %v844_v55, %v810_v9  ;;  %v1586_v44 = vmul.f32 %v1585_v47, %v3342_v31  ;;  %vm1607_vm15 = vcmp.eq.f32.partialorder %v1606_v23, 8.507059e+37  ;;  %v995_v36 = vmul.f32 %v3130_v22, %v977_v1 }
 0x196   : > { %v1601_v49 = vadd.f32 %v2155_v5, %v1600_v14  ;;  %v1636_v39 = vadd.f32 1.0, %v1635_v24  ;;  %v1657_v20 = vadd.f32 0.00028619796, %v1656_v43  ;;  %v1668_v52 = vadd.f32 0.001143296, %v1667_v4 }
 0x197   : > { %v910_v8 = vadd.f32 %v894_v53, %v860_v41  ;;  %v1623_v28 = vadd.f32 0.18741608, %v1622_v63  ;;  %v1045_v37 = vmul.f32 %v3143_v61, %v1027_v17  ;;  %v1074_v27 = vmul.f32 0.5, %v3332_v58 }
 0x198   : > { %v1605_v56 = vsel %vm1604_vm14, %v2155_v5, %v1601_v49  ;;  %2156 = vrcp.f32 %v1636_v39  ;;  %v1658_v50 = vmul.f32 %v1657_v20, %v3465_v32  ;;  %v1669_v6 = vmul.f32 %v1668_v52, %v3465_v32 }
 0x199   : > { %v1610_v62 = vsel %vm1607_vm15, %v1609_v11, %v1605_v56  ;;  %v961_v34 = vadd.f32 %v945_v15, %v910_v8  ;;  %v1624_v47 = vmul.f32 %v1623_v28, %v3416_v54  ;;  %vm1642_vm0 = vweird.f32 %v1636_v39 }
 0x19a   : > { %v1611_v45 = vmul.f32 %v1610_v62, %v1586_v44  ;;  %v1659_v40 = vadd.f32 0.0036580483, %v1658_v50  ;;  %v1670_v31 = vadd.f32 0.014752088, %v1669_v6  ;;  %v1648_v16 = vand.u32 2147483648, %v1636_v39  ;;  %v1839_v6 = vpop.f32.mrf.mxu1 }
 0x19b   : > { %v1011_v25 = vadd.f32 %v995_v36, %v961_v34  ;;  %v1625_v2 = vadd.f32 1.1283791, %v1624_v47  ;;  %v1646_v48 = vand.u32 2147483647, %v1636_v39  ;;  %v1075_v1 = vmul.f32 0.5, %v3390_v7 }
 0x19c   : > { %v2048_v12 = vclamps-f32 %v1611_v45, 1.0  ;;  %v1671_v22 = vmul.f32 %v1670_v31, %v3465_v32  ;;  %v1660_v30 = vmul.f32 %v1659_v40, %v3465_v32  ;;  %v1649_v38 = vor.u32 1.1754944e-38, %v1648_v16 }
 0x19d   : > { %v3485_v3 = vadd.f32 %v1045_v37, %v1011_v25  ;;  %v1626_v35 = vmul.f32 %v1625_v2, %v3402_v13  ;;  %vm1647_vm4 = vcmp.eq.f32.partialorder %v1646_v48, 8.507059e+37 }
 0x19e   : > { %v1746_v51 = vadd.f32 1.0, %v2048_v12  ;;  %v2157_v33 = vpop.eup %2156  ;;  %v1672_v57 = vadd.f32 0.112945676, %v1671_v22  ;;  %v1661_v10 = vadd.f32 0.05243302, %v1660_v30 }
 0x19f   : > { %v1638_v18 = vmul.f32 %v2157_v33, %v1636_v39  ;;  %v3489_v61 = vmul.f32 0.70710677, %v3485_v3  ;;  %vm1643_vm2 = vweird.f32 %v2157_v33 }
 0x1a0   : > { %v1762_v5 = vmul.f32 %v1746_v51, %v1074_v27  ;;  %v1673_v54 = vmul.f32 %v1672_v57, %v3465_v32  ;;  %vm1644_vm3 = vmor %vm1642_vm0, %vm1643_vm2  ;;  %v1662_v9 = vmul.f32 %v1661_v10, %v3465_v32 }
 0x1a1   : > { %v1639_v58 = vsub.f32 1.0, %v1638_v18  ;;  %v1694_v0 = vmul.f32 %v3489_v61, %v3489_v61 }
 0x1a2   : > { %2064 = vmatmul.msk.f32.gmra.mxu3 %vm564_vm8, %v1762_v5  ;;  %v1674_v21 = vadd.f32 0.4994258, %v1673_v54  ;;  %v1663_v11 = vadd.f32 0.18741608, %v1662_v9  ;;  %v1842_v30 = vpop.f32.mrf.mxu1 }
 0x1a3   : > { %v1640_v46 = vmul.f32 %v2157_v33, %v1639_v58  ;;  %v3495_v60 = vmin.f32 %v1694_v0, 16.0 }
 0x1a4   : > { %v1675_v55 = vmul.f32 %v1674_v21, %v3465_v32  ;;  %v1664_v15 = vmul.f32 %v1663_v11, %v3465_v32  ;;  %v3514_v32 = vld [vmem:[%s3599_s6] ss:$0 sm:$0xff] }
 0x1a5   : > { %v1641_v19 = vadd.f32 %v2157_v33, %v1640_v46  ;;  %v1696_v26 = vmul.f32 2.1237322e-06, %v3495_v60  ;;  %v1707_v23 = vmul.f32 3.8918573e-05, %v3495_v60  ;;  %v1840_v40 = vadd.f32 %v3514_v32, %v1839_v6 }
 0x1a6   : > { %v1676_v59 = vadd.f32 1.0, %v1675_v55  ;;  %v1665_v36 = vadd.f32 1.1283791, %v1664_v15  ;;  %v1843_v58 = vadd.f32 %v3514_v32, %v1842_v30 }
 0x1a7   : > { %v1645_v14 = vsel %vm1644_vm3, %v2157_v33, %v1641_v19  ;;  %v1697_v24 = vadd.f32 0.00028619796, %v1696_v26  ;;  %v1708_v43 = vadd.f32 0.001143296, %v1707_v23  ;;  %1887 = vst.msk [vmem:[%s3519_s14] sm:$0xff] %vm342_vm1, %v1840_v40 }
 0x1a8   : > { %v1650_v53 = vsel %vm1647_vm4, %v1649_v38, %v1645_v14  ;;  %2158 = vrcp.f32 %v1676_v59  ;;  %vm1682_vm5 = vweird.f32 %v1676_v59  ;;  %v1686_v28 = vand.u32 2147483647, %v1676_v59  ;;  %1888 = vst.msk [vmem:[%s3519_s14 + $0x8] sm:$0xff] %vm342_vm1, %v1843_v58 }
 0x1a9   : > { %v1651_v4 = vmul.f32 %v1650_v53, %v1626_v35  ;;  %v1698_v63 = vmul.f32 %v1697_v24, %v3495_v60  ;;  %v1709_v41 = vmul.f32 %v1708_v43, %v3495_v60  ;;  %v1688_v50 = vand.u32 2147483648, %v1676_v59 }
 0x1aa   : > { %v1666_v27 = vmul.f32 %v1665_v36, %v3452_v42  ;;  %vm1687_vm9 = vcmp.eq.f32.partialorder %v1686_v28, 8.507059e+37  ;;  %v1076_v42 = vmul.f32 0.5, %v3444_v29  ;;  %v1845_v21 = vpop.f32.mrf.mxu1 }
 0x1ab   : > { %v2049_v49 = vclamps-f32 %v1651_v4, 1.0  ;;  %v1699_v39 = vadd.f32 0.0036580483, %v1698_v63  ;;  %v1710_v20 = vadd.f32 0.014752088, %v1709_v41  ;;  %v1689_v51 = vor.u32 1.1754944e-38, %v1688_v50 }
 0x1ac   : > { %v1846_v55 = vadd.f32 %v3514_v32, %v1845_v21  ;;  %v1077_v4 = vmul.f32 0.5, %v3485_v3 }
 0x1ad   : > { %v1747_v13 = vadd.f32 1.0, %v2049_v49  ;;  %v1711_v44 = vmul.f32 %v1710_v20, %v3495_v60  ;;  %v1700_v17 = vmul.f32 %v1699_v39, %v3495_v60 }
 0x1ae   : > { %v2159_v56 = vpop.eup %2158  ;;  %1889 = vst.msk [vmem:[%s3519_s14 + $0x10] sm:$0xff] %vm342_vm1, %v1846_v55 }
 0x1af   : > { %v1763_v52 = vmul.f32 %v1747_v13, %v1075_v1  ;;  %v1678_v8 = vmul.f32 %v2159_v56, %v1676_v59  ;;  %v1712_v62 = vadd.f32 0.112945676, %v1711_v44  ;;  %vm1683_vm6 = vweird.f32 %v2159_v56 }
 0x1b0   : > { %v1701_v37 = vadd.f32 0.05243302, %v1700_v17  ;;  %vm1684_vm7 = vmor %vm1682_vm5, %vm1683_vm6 }
 0x1b1   : > { %2065 = vmatmul.msk.f32.gmra.mxu3 %vm564_vm8, %v1763_v52  ;;  %v1679_v45 = vsub.f32 1.0, %v1678_v8  ;;  %v1713_v7 = vmul.f32 %v1712_v62, %v3495_v60 }
 0x1b2   : > { %v1702_v22 = vmul.f32 %v1701_v37, %v3495_v60  ;;  %v1848_v59 = vpop.f32.mrf.mxu1 }
 0x1b3   : > { %v1680_v34 = vmul.f32 %v2159_v56, %v1679_v45  ;;  %v1714_v12 = vadd.f32 0.4994258, %v1713_v7  ;;  %v1849_v24 = vadd.f32 %v3514_v32, %v1848_v59 }
 0x1b4   : > { %v1703_v2 = vadd.f32 0.18741608, %v1702_v22 }
 0x1b5   : > { %v1681_v31 = vadd.f32 %v2159_v56, %v1680_v34  ;;  %v1715_v25 = vmul.f32 %v1714_v12, %v3495_v60  ;;  %1890 = vst.msk [vmem:[%s3519_s14 + $0x18] sm:$0xff] %vm342_vm1, %v1849_v24 }
 0x1b6   : > { %v1704_v46 = vmul.f32 %v1703_v2, %v3495_v60 }
 0x1b7   : > { %v1685_v47 = vsel %vm1684_vm7, %v2159_v56, %v1681_v31  ;;  %v1716_v33 = vadd.f32 1.0, %v1715_v25 }
 0x1b8   : > { %v1690_v5 = vsel %vm1687_vm9, %v1689_v51, %v1685_v47  ;;  %v1705_v19 = vadd.f32 1.1283791, %v1704_v46 }
 0x1b9   : > { %v1691_v18 = vmul.f32 %v1690_v5, %v1666_v27  ;;  %2160 = vrcp.f32 %v1716_v33  ;;  %v1728_v38 = vand.u32 2147483648, %v1716_v33  ;;  %vm1722_vm10 = vweird.f32 %v1716_v33 }
 0x1ba   : > { %v1726_v29 = vand.u32 2147483647, %v1716_v33  ;;  %v1706_v60 = vmul.f32 %v1705_v19, %v3489_v61  ;;  %v1851_v61 = vpop.f32.mrf.mxu1 }
 0x1bb   : > { %v2050_v57 = vclamps-f32 %v1691_v18, 1.0  ;;  %v1729_v35 = vor.u32 1.1754944e-38, %v1728_v38  ;;  %v1852_v63 = vadd.f32 %v3514_v32, %v1851_v61 }
 0x1bc   : > { %vm1727_vm13 = vcmp.eq.f32.partialorder %v1726_v29, 8.507059e+37 }
 0x1bd   : > { %v1748_v16 = vadd.f32 1.0, %v2050_v57  ;;  %1891 = vst.msk [vmem:[%s3519_s14 + $0x20] sm:$0xff] %vm342_vm1, %v1852_v63 }
 0x1bf   : > { %v2161_v54 = vpop.eup %2160  ;;  %v1764_v0 = vmul.f32 %v1748_v16, %v1076_v42 }
 0x1c0   : > { %v1718_v48 = vmul.f32 %v2161_v54, %v1716_v33  ;;  %vm1723_vm11 = vweird.f32 %v2161_v54 }
 0x1c1   : > { %2066 = vmatmul.msk.f32.gmra.mxu3 %vm564_vm8, %v1764_v0  ;;  %vm1724_vm12 = vmor %vm1722_vm10, %vm1723_vm11 }
 0x1c2   : > { %v1719_v10 = vsub.f32 1.0, %v1718_v48  ;;  %v1854_v41 = vpop.f32.mrf.mxu1 }
 0x1c3   : > { %v1855_v13 = vadd.f32 %v3514_v32, %v1854_v41 }
 0x1c4   : > { %v1720_v26 = vmul.f32 %v2161_v54, %v1719_v10 }
 0x1c5   : > { %1892 = vst.msk [vmem:[%s3519_s14 + $0x28] sm:$0xff] %vm342_vm1, %v1855_v13 }
 0x1c6   : > { %v1721_v23 = vadd.f32 %v2161_v54, %v1720_v26 }
 0x1c8   : > { %v1725_v14 = vsel %vm1724_vm12, %v2161_v54, %v1721_v23 }
 0x1c9   : > { %v1730_v9 = vsel %vm1727_vm13, %v1729_v35, %v1725_v14 }
 0x1ca   : > { %v1731_v53 = vmul.f32 %v1730_v9, %v1706_v60  ;;  %v1857_v3 = vpop.f32.mrf.mxu1 }
 0x1cb   : > { %v1858_v20 = vadd.f32 %v3514_v32, %v1857_v3 }
 0x1cc   : > { %v2051_v43 = vclamps-f32 %v1731_v53, 1.0 }
 0x1cd   : > { %1893 = vst.msk [vmem:[%s3519_s14 + $0x30] sm:$0xff] %vm342_vm1, %v1858_v20 }
 0x1ce   : > { %v1749_v49 = vadd.f32 1.0, %v2051_v43 }
 0x1d0   : > { %v1765_v11 = vmul.f32 %v1749_v49, %v1077_v4 }
 0x1d2   : > { %2067 = vmatmul.msk.f32.gmra.mxu3 %vm564_vm8, %v1765_v11 }
 0x1dd   : > { %v1866_v1 = vpop.f32.mrf.mxu3 }
 0x1de   : > { %v1867_v39 = vadd.f32 %v3514_v32, %v1866_v1 }
 0x1e0   : > { %1896 = vst.msk [vmem:[%s3519_s14 + $0x48] sm:$0xff] %vm342_vm1, %v1867_v39 }
 0x1e5   : > { %v1860_v52 = vpop.f32.mrf.mxu1 }
 0x1e6   : > { %v1861_v15 = vadd.f32 %v3514_v32, %v1860_v52 }
 0x1e8   : > { %1894 = vst.msk [vmem:[%s3519_s14 + $0x38] sm:$0xff] %vm342_vm1, %v1861_v15 }
 0x1fb   : > { %v1869_v44 = vpop.f32.mrf.mxu3 }
 0x1fc   : > { %v1870_v56 = vadd.f32 %v3514_v32, %v1869_v44 }
 0x1fe   : > { %1897 = vst.msk [vmem:[%s3519_s14 + $0x50] sm:$0xff] %vm342_vm1, %v1870_v56 }
 0x207   : > { %v1863_v8 = vpop.f32.mrf.mxu1 }
 0x208   : > { %v1864_v17 = vadd.f32 %v3514_v32, %v1863_v8 }
 0x20a   : > { %1895 = vst.msk [vmem:[%s3519_s14 + $0x40] sm:$0xff] %vm342_vm1, %v1864_v17 }
 0x218   : > { %v1872_v62 = vpop.f32.mrf.mxu3 }
 0x219   : > { %v1873_v36 = vadd.f32 %v3514_v32, %v1872_v62 }
 0x21b   : > { %1898 = vst.msk [vmem:[%s3519_s14 + $0x58] sm:$0xff] %vm342_vm1, %v1873_v36 }
 0x225   : > { %v1875_v45 = vpop.f32.mrf.mxu3 }
 0x226   : > { %v1876_v7 = vadd.f32 %v3514_v32, %v1875_v45 }
 0x228   : > { %1899 = vst.msk [vmem:[%s3519_s14 + $0x60] sm:$0xff] %vm342_vm1, %v1876_v7 }
 0x234   : > { %v1878_v28 = vpop.f32.mrf.mxu3 }
 0x235   : > { %v1879_v50 = vadd.f32 %v3514_v32, %v1878_v28 }
 0x237   : > { %1900 = vst.msk [vmem:[%s3519_s14 + $0x68] sm:$0xff] %vm342_vm1, %v1879_v50 }
 0x244   : > { %v1881_v6 = vpop.f32.mrf.mxu3 }
 0x245   : > { %v1882_v34 = vadd.f32 %v3514_v32, %v1881_v6 }
 0x247   : > { %1901 = vst.msk [vmem:[%s3519_s14 + $0x70] sm:$0xff] %vm342_vm1, %v1882_v34 }
 0x255   : > { %v1884_v37 = vpop.f32.mrf.mxu3 }
 0x256   : > { %v1885_v12 = vadd.f32 %v3514_v32, %v1884_v37 }
 0x258   : > { %1902 = vst.msk [vmem:[%s3519_s14 + $0x78] sm:$0xff] %vm342_vm1, %v1885_v12 }
 0x259 PF: > { %s17_s28 = sadd.s32 1, %s2210_s28   ;;  %s3635_s24 = smov %s2202_s26 }
 0x25a   : > { %p14_p9 = scmp.ge.s32.totalorder %s17_s28, 6   ;;  %s3636_s25 = smov %s2206_s27 }
 0x25b   : > { %s3637_s26 = smov %s3640_s29  ;;  %s3638_s27 = smov %s3644_s30 }
 0x25c   :  { %16 = sbr.rel (!%p14_p9) target bundleno = 3 (0x3), region = 83 }

</bundles_post_ra>
